<compile_context>
chip_gen: v7x
topology: tpu7x:2x2x1
jax: 0.10.0
libtpu: 0.0.40
codegen_flags: <defaults>
</compile_context>

<pallas_src>
import functools
import math

import jax
import jax.numpy as jnp
from jax.experimental import pallas as pl
from jax.experimental.pallas import tpu as pltpu


def _gat_kernel(xf_ref, xt_ref, ei_ref, t_ref, msg_ref,
                wsrc_ref, bsrc_ref, wdst_ref, bdst_ref,
                wt_ref, bt_ref, wet_ref, wem_ref, hp_ref,
                out_ref, *,
                num_nodes, num_edges, heads, head_dim, node_tile):
    f32 = jnp.float32
    hc = heads * head_dim
    inv_sqrt_c = 1.0 / math.sqrt(head_dim)
    gather_dn = (((0,), (0,)), ((), ()))      # contract the node dim (transpose-A matmul)

    tile_base = pl.program_id(0) * node_tile

    # ---- fused node projections ----
    # xf: (N, F+1) = [x | last_update]; wsrc: (F+1, 2*HC+1) -> [k_n | v_n | last_update]
    kvl = jnp.dot(xf_ref[...], wsrc_ref[...], preferred_element_type=f32) + bsrc_ref[...]
    # xt: (TN, F+1); wdst: (F+1, 2*HC) -> [q_n | skip] for this tile's destination nodes only
    qs = jnp.dot(xt_ref[...], wdst_ref[...], preferred_element_type=f32) + bdst_ref[...]

    # ---- one-hot gather / scatter matrices from edge_index (2, E) ----
    ei = ei_ref[...]
    src_row = ei[0:1, :]                                                    # (1, E)
    dst_row = ei[1:2, :]                                                    # (1, E)
    src_iota = jax.lax.broadcasted_iota(jnp.int32, (num_nodes, num_edges), 0)
    onehot_src = (src_iota == src_row).astype(f32)                          # (N, E)
    dst_iota = jax.lax.broadcasted_iota(jnp.int32, (node_tile, num_edges), 0) + tile_base
    onehot_dst = (dst_iota == dst_row).astype(f32)                          # (TN, E)

    # Single fused source-side gather: [k | v | last_update][src]           (E, 2*HC+1)
    kvl_e = jax.lax.dot_general(onehot_src, kvl, gather_dn, preferred_element_type=f32)
    # Destination-side gather of q (only edges whose dst lies in this tile matter)
    q_e = jax.lax.dot_general(onehot_dst, qs[:, :hc], gather_dn,
                              preferred_element_type=f32)                   # (E, HC)

    # ---- time encoding + lin_edge (split-weight, no bias) ----
    rel_t = kvl_e[:, 2 * hc:2 * hc + 1] - t_ref[...]                        # (E, 1)
    rel_t_enc = jnp.cos(rel_t * wt_ref[...] + bt_ref[...])                  # (E, T)
    e_proj = (jnp.dot(rel_t_enc, wet_ref[...], preferred_element_type=f32)
              + jnp.dot(msg_ref[...], wem_ref[...], preferred_element_type=f32))   # (E, HC)

    k_e = kvl_e[:, :hc] + e_proj
    v_e = kvl_e[:, hc:2 * hc] + e_proj

    # ---- both heads at once, everything kept HC lanes wide ----
    # hp: (HC, HC) block matrix, hp[i, j] = 1 iff lanes i and j belong to the same head, so
    # prod @ hp replicates each head's q·k sum across that head's lanes.
    prod = q_e * k_e                                                        # (E, HC)
    alpha = jnp.dot(prod, hp_ref[...], preferred_element_type=f32) * inv_sqrt_c   # (E, HC)

    # Global (per-head) max stabilization: softmax is invariant to any per-segment constant,
    # so the exact per-destination max (and its (N,E) transient) is unnecessary.
    m = jnp.max(alpha, axis=0, keepdims=True)                               # (1, HC)
    p = jnp.exp(alpha - m)                                                  # (E, HC)
    denom_n = jnp.dot(onehot_dst, p, preferred_element_type=f32)            # (TN, HC)
    denom_e = jax.lax.dot_general(onehot_dst, denom_n, gather_dn,
                                  preferred_element_type=f32)               # (E, HC)
    # Edges whose destination falls outside this node tile have denom 0 -> contribute nothing.
    alpha_hat = jnp.where(denom_e > 0.0, p / denom_e, 0.0)                  # (E, HC)

    agg = jnp.dot(onehot_dst, v_e * alpha_hat, preferred_element_type=f32)  # (TN, HC)

    # Single full-width (32-lane) store: attention aggregate + skip connection.
    out_ref[...] = agg + qs[:, hc:]


def init_params(key, in_channels, out_channels, msg_dim, time_dim):
    hc = out_channels
    edge_dim = msg_dim + time_dim
    ks = jax.random.split(key, 6)

    def linear(k, fan_in, fan_out, bias=True):
        bound = 1.0 / math.sqrt(fan_in)
        kw, kb = jax.random.split(k)
        w = jax.random.uniform(kw, (fan_out, fan_in), jnp.float32, -bound, bound)
        b = jax.random.uniform(kb, (fan_out,), jnp.float32, -bound, bound) if bias else None
        return w, b

    wt, bt = linear(ks[0], 1, time_dim)
    wq, bq = linear(ks[1], in_channels, hc)
    wk, bk = linear(ks[2], in_channels, hc)
    wv, bv = linear(ks[3], in_channels, hc)
    we, _ = linear(ks[4], edge_dim, hc, bias=False)
    ws, bs = linear(ks[5], in_channels, hc)
    return dict(wt=wt, bt=bt, wq=wq, bq=bq, wk=wk, bk=bk,
                wv=wv, bv=bv, we=we, ws=ws, bs=bs)


def graph_attention_embedding(x, last_update, edge_index, t, msg, params,
                              *, heads=2, time_dim=8, node_tile=None):
    n, f_in = x.shape
    e = edge_index.shape[1]
    hc = params['wq'].shape[0]
    c = hc // heads
    f32 = jnp.float32

    # Destination-node tile for the parallel grid axis (v7x megacore); must divide N and keep the
    # sublane constraint (multiple of 8 or full). Fall back to the whole node set otherwise.
    if node_tile is None or n % node_tile != 0 or (node_tile % 8 != 0 and node_tile != n):
        node_tile = n
    grid = (n // node_tile,)

    # [x | last_update] so the last_update[src] gather rides along the fused src-side matmul.
    x_aug = jnp.concatenate([x.astype(f32),
                             last_update.reshape(n, 1).astype(f32)], axis=1)        # (N, F+1)

    # Fused source-side weight: [wk | wv | last_update-passthrough] -> (F+1, 2*HC+1)
    w_kv = jnp.concatenate([params['wk'].T, params['wv'].T], axis=1).astype(f32)     # (F, 2HC)
    w_src = jnp.zeros((f_in + 1, 2 * hc + 1), f32)
    w_src = w_src.at[:f_in, :2 * hc].set(w_kv)
    w_src = w_src.at[f_in, 2 * hc].set(1.0)
    b_src = jnp.concatenate([params['bk'], params['bv'],
                             jnp.zeros((1,), f32)]).reshape(1, 2 * hc + 1).astype(f32)

    # Fused destination-side weight: [wq | wskip] -> (F+1, 2*HC), last (last_update) row zero.
    w_qs = jnp.concatenate([params['wq'].T, params['ws'].T], axis=1).astype(f32)     # (F, 2HC)
    w_dst = jnp.concatenate([w_qs, jnp.zeros((1, 2 * hc), f32)], axis=0)             # (F+1, 2HC)
    b_dst = jnp.concatenate([params['bq'], params['bs']]).reshape(1, 2 * hc).astype(f32)

    # Head-block projection matrix (HC, HC): 1 where two lanes belong to the same head.
    lane_head = jnp.arange(hc) // c
    head_proj = (lane_head[:, None] == lane_head[None, :]).astype(f32)

    inputs = (
        x_aug,                                   # full (source side)
        x_aug,                                   # tiled (destination side)
        edge_index.astype(jnp.int32),
        t.reshape(e, 1).astype(f32),
        msg.astype(f32),
        w_src, b_src, w_dst, b_dst,
        params['wt'].reshape(1, time_dim).astype(f32),
        params['bt'].reshape(1, time_dim).astype(f32),
        params['we'][:, :time_dim].T.astype(f32),
        params['we'][:, time_dim:].T.astype(f32),
        head_proj,
    )

    def full_spec(arr):
        return pl.BlockSpec(arr.shape, lambda i: (0, 0))

    in_specs = [
        full_spec(x_aug),
        pl.BlockSpec((node_tile, f_in + 1), lambda i: (i, 0)),
        full_spec(inputs[2]),
        full_spec(inputs[3]),
        full_spec(inputs[4]),
        full_spec(w_src), full_spec(b_src), full_spec(w_dst), full_spec(b_dst),
        full_spec(inputs[9]), full_spec(inputs[10]),
        full_spec(inputs[11]), full_spec(inputs[12]),
        full_spec(head_proj),
    ]

    kernel = functools.partial(_gat_kernel, num_nodes=n, num_edges=e,
                               heads=heads, head_dim=c, node_tile=node_tile)
    return pl.pallas_call(
        kernel,
        out_shape=jax.ShapeDtypeStruct((n, hc), jnp.float32),
        grid=grid,
        in_specs=in_specs,
        out_specs=pl.BlockSpec((node_tile, hc), lambda i: (i, 0)),
        compiler_params=pltpu.CompilerParams(
            dimension_semantics=("parallel",),
            vmem_limit_bytes=48 * 1024 * 1024),
    )(*inputs)


def reference_forward(x, last_update, edge_index, t, msg, params, heads=2):
    # Pure-JAX reference replicating PyG TransformerConv (eval) + TimeEncoder semantics.
    src, dst = edge_index[0], edge_index[1]
    n = x.shape[0]
    rel_t = (last_update[src] - t).astype(x.dtype)
    rel_t_enc = jnp.cos(rel_t[:, None] * params['wt'][:, 0][None, :] + params['bt'][None, :])
    edge_attr = jnp.concatenate([rel_t_enc, msg], axis=-1)
    q_n = x @ params['wq'].T + params['bq']
    k_n = x @ params['wk'].T + params['bk']
    v_n = x @ params['wv'].T + params['bv']
    e = edge_attr @ params['we'].T
    q = q_n[dst]
    k = k_n[src] + e
    v = v_n[src] + e
    num_e, hc = q.shape
    c = hc // heads
    q = q.reshape(num_e, heads, c)
    k = k.reshape(num_e, heads, c)
    v = v.reshape(num_e, heads, c)
    alpha = (q * k).sum(-1) / math.sqrt(c)
    m = jnp.full((n, heads), -1e30, jnp.float32).at[dst].max(alpha)
    p = jnp.exp(alpha - m[dst])
    s = jnp.zeros((n, heads), jnp.float32).at[dst].add(p)
    a = p / s[dst]
    out = jnp.zeros((n, heads, c), jnp.float32).at[dst].add(a[..., None] * v)
    out = out.reshape(n, hc)
    return out + (x @ params['ws'].T + params['bs'])


if __name__ == "__main__":
    key = jax.random.PRNGKey(0)
    kx, kl, ke, kt, km, kp = jax.random.split(key, 6)

    num_nodes, num_edges = 16, 32
    in_channels, out_channels = 32, 32        # heads=2 -> 16 channels per head
    msg_dim, time_dim = 16, 8                 # edge_dim = msg_dim + time_enc.out_channels = 24

    x = jax.random.normal(kx, (num_nodes, in_channels), jnp.float32)
    last_update = jax.random.randint(kl, (num_nodes,), 0, 100).astype(jnp.float32)
    edge_index = jax.random.randint(ke, (2, num_edges), 0, num_nodes).astype(jnp.int32)
    t = jax.random.randint(kt, (num_edges,), 0, 100).astype(jnp.float32)
    msg = jax.random.normal(km, (num_edges, msg_dim), jnp.float32)

    params = init_params(kp, in_channels, out_channels, msg_dim, time_dim)

    out = graph_attention_embedding(x, last_update, edge_index, t, msg, params,
                                    heads=2, time_dim=time_dim, node_tile=8)
    jax.block_until_ready(out)

    ref = reference_forward(x, last_update, edge_index, t, msg, params, heads=2)
    assert out.shape == (num_nodes, out_channels)
    err = float(jnp.abs(out - ref).max())
    assert jnp.allclose(out, ref, atol=1e-3, rtol=1e-3), err
    print("KERNEL_OK")
</pallas_src>

<mosaic_0001>
module attributes {stable_mosaic.version = 11 : i64} {
  func.func @_gat_kernel(%arg0: i32, %arg1: memref<16x33xf32, #tpu.memory_space<vmem>>, %arg2: memref<8x33xf32, #tpu.memory_space<vmem>>, %arg3: memref<2x32xi32, #tpu.memory_space<vmem>>, %arg4: memref<32x1xf32, #tpu.memory_space<vmem>>, %arg5: memref<32x16xf32, #tpu.memory_space<vmem>>, %arg6: memref<33x65xf32, #tpu.memory_space<vmem>>, %arg7: memref<1x65xf32, #tpu.memory_space<vmem>>, %arg8: memref<33x64xf32, #tpu.memory_space<vmem>>, %arg9: memref<1x64xf32, #tpu.memory_space<vmem>>, %arg10: memref<1x8xf32, #tpu.memory_space<vmem>>, %arg11: memref<1x8xf32, #tpu.memory_space<vmem>>, %arg12: memref<8x32xf32, #tpu.memory_space<vmem>>, %arg13: memref<16x32xf32, #tpu.memory_space<vmem>>, %arg14: memref<32x32xf32, #tpu.memory_space<vmem>>, %arg15: memref<8x32xf32, #tpu.memory_space<vmem>>) attributes {dimension_semantics = [#tpu.dimension_semantics<parallel>], iteration_bounds = array<i64: 2>, scalar_prefetch = 0 : i64, scratch_operands = 0 : i64, tpu.core_type = #tpu.core_type<tc>, window_params = [{pipeline_mode = #tpu.pipeline_mode<synchronous>, transform_indices = @transform_0, window_bounds = array<i64: 16, 33>}, {transform_indices = @transform_1, window_bounds = array<i64: 8, 33>}, {pipeline_mode = #tpu.pipeline_mode<synchronous>, transform_indices = @transform_2, window_bounds = array<i64: 2, 32>}, {pipeline_mode = #tpu.pipeline_mode<synchronous>, transform_indices = @transform_3, window_bounds = array<i64: 32, 1>}, {pipeline_mode = #tpu.pipeline_mode<synchronous>, transform_indices = @transform_4, window_bounds = array<i64: 32, 16>}, {pipeline_mode = #tpu.pipeline_mode<synchronous>, transform_indices = @transform_5, window_bounds = array<i64: 33, 65>}, {pipeline_mode = #tpu.pipeline_mode<synchronous>, transform_indices = @transform_6, window_bounds = array<i64: 1, 65>}, {pipeline_mode = #tpu.pipeline_mode<synchronous>, transform_indices = @transform_7, window_bounds = array<i64: 33, 64>}, {pipeline_mode = #tpu.pipeline_mode<synchronous>, transform_indices = @transform_8, window_bounds = array<i64: 1, 64>}, {pipeline_mode = #tpu.pipeline_mode<synchronous>, transform_indices = @transform_9, window_bounds = array<i64: 1, 8>}, {pipeline_mode = #tpu.pipeline_mode<synchronous>, transform_indices = @transform_10, window_bounds = array<i64: 1, 8>}, {pipeline_mode = #tpu.pipeline_mode<synchronous>, transform_indices = @transform_11, window_bounds = array<i64: 8, 32>}, {pipeline_mode = #tpu.pipeline_mode<synchronous>, transform_indices = @transform_12, window_bounds = array<i64: 16, 32>}, {pipeline_mode = #tpu.pipeline_mode<synchronous>, transform_indices = @transform_13, window_bounds = array<i64: 32, 32>}, {transform_indices = @transform_14, window_bounds = array<i64: 8, 32>}]} {
    %c8_i32 = arith.constant 8 : i32
    %0 = arith.muli %arg0, %c8_i32 : i32
    %c0 = arith.constant 0 : index
    %c0_0 = arith.constant 0 : index
    %1 = vector.load %arg1[%c0, %c0_0] : memref<16x33xf32, #tpu.memory_space<vmem>>, vector<16x33xf32>
    %c0_1 = arith.constant 0 : index
    %c0_2 = arith.constant 0 : index
    %2 = vector.load %arg6[%c0_1, %c0_2] : memref<33x65xf32, #tpu.memory_space<vmem>>, vector<33x65xf32>
    %cst = arith.constant dense<0.000000e+00> : vector<16x65xf32>
    %3 = tpu.matmul %1, %2, %cst {dimension_numbers = #tpu.dot_dimension_numbers<[1], [0], [0], [1], [0, 0, 1, 1], [], []>} : vector<16x33xf32>, vector<33x65xf32>, vector<16x65xf32> -> vector<16x65xf32>
    %c0_3 = arith.constant 0 : index
    %c0_4 = arith.constant 0 : index
    %4 = vector.load %arg7[%c0_3, %c0_4] : memref<1x65xf32, #tpu.memory_space<vmem>>, vector<1x65xf32>
    %5 = vector.broadcast %4 : vector<1x65xf32> to vector<16x65xf32>
    %6 = arith.addf %3, %5 : vector<16x65xf32>
    %c0_5 = arith.constant 0 : index
    %c0_6 = arith.constant 0 : index
    %7 = vector.load %arg2[%c0_5, %c0_6] : memref<8x33xf32, #tpu.memory_space<vmem>>, vector<8x33xf32>
    %c0_7 = arith.constant 0 : index
    %c0_8 = arith.constant 0 : index
    %8 = vector.load %arg8[%c0_7, %c0_8] : memref<33x64xf32, #tpu.memory_space<vmem>>, vector<33x64xf32>
    %cst_9 = arith.constant dense<0.000000e+00> : vector<8x64xf32>
    %9 = tpu.matmul %7, %8, %cst_9 {dimension_numbers = #tpu.dot_dimension_numbers<[1], [0], [0], [1], [0, 0, 1, 1], [], []>} : vector<8x33xf32>, vector<33x64xf32>, vector<8x64xf32> -> vector<8x64xf32>
    %c0_10 = arith.constant 0 : index
    %c0_11 = arith.constant 0 : index
    %10 = vector.load %arg9[%c0_10, %c0_11] : memref<1x64xf32, #tpu.memory_space<vmem>>, vector<1x64xf32>
    %11 = vector.broadcast %10 : vector<1x64xf32> to vector<8x64xf32>
    %12 = arith.addf %9, %11 : vector<8x64xf32>
    %c0_12 = arith.constant 0 : index
    %c0_13 = arith.constant 0 : index
    %13 = vector.load %arg3[%c0_12, %c0_13] : memref<2x32xi32, #tpu.memory_space<vmem>>, vector<2x32xi32>
    %14 = vector.extract_strided_slice %13 {offsets = [0, 0], sizes = [1, 32], strides = [1, 1]} : vector<2x32xi32> to vector<1x32xi32>
    %15 = vector.extract_strided_slice %13 {offsets = [1, 0], sizes = [1, 32], strides = [1, 1]} : vector<2x32xi32> to vector<1x32xi32>
    %16 = tpu.iota {dimensions = array<i32: 0>} : vector<16x32xi32>
    %17 = vector.broadcast %14 : vector<1x32xi32> to vector<16x32xi32>
    %18 = arith.cmpi eq, %16, %17 : vector<16x32xi32>
    %19 = arith.extui %18 : vector<16x32xi1> to vector<16x32xi32>
    %20 = arith.sitofp %19 : vector<16x32xi32> to vector<16x32xf32>
    %21 = tpu.iota {dimensions = array<i32: 0>} : vector<8x32xi32>
    %22 = vector.broadcast %0 : i32 to vector<8x32xi32>
    %23 = arith.addi %21, %22 : vector<8x32xi32>
    %24 = vector.broadcast %15 : vector<1x32xi32> to vector<8x32xi32>
    %25 = arith.cmpi eq, %23, %24 : vector<8x32xi32>
    %26 = arith.extui %25 : vector<8x32xi1> to vector<8x32xi32>
    %27 = arith.sitofp %26 : vector<8x32xi32> to vector<8x32xf32>
    %cst_14 = arith.constant dense<0.000000e+00> : vector<32x65xf32>
    %28 = tpu.matmul %20, %6, %cst_14 {dimension_numbers = #tpu.dot_dimension_numbers<[0], [0], [1], [1], [0, 1, 1, 1], [], []>} : vector<16x32xf32>, vector<16x65xf32>, vector<32x65xf32> -> vector<32x65xf32>
    %29 = vector.extract_strided_slice %12 {offsets = [0, 0], sizes = [8, 32], strides = [1, 1]} : vector<8x64xf32> to vector<8x32xf32>
    %cst_15 = arith.constant dense<0.000000e+00> : vector<32x32xf32>
    %30 = tpu.matmul %27, %29, %cst_15 {dimension_numbers = #tpu.dot_dimension_numbers<[0], [0], [1], [1], [0, 1, 1, 1], [], []>} : vector<8x32xf32>, vector<8x32xf32>, vector<32x32xf32> -> vector<32x32xf32>
    %31 = vector.extract_strided_slice %28 {offsets = [0, 64], sizes = [32, 1], strides = [1, 1]} : vector<32x65xf32> to vector<32x1xf32>
    %c0_16 = arith.constant 0 : index
    %c0_17 = arith.constant 0 : index
    %32 = vector.load %arg4[%c0_16, %c0_17] : memref<32x1xf32, #tpu.memory_space<vmem>>, vector<32x1xf32>
    %33 = arith.subf %31, %32 : vector<32x1xf32>
    %c0_18 = arith.constant 0 : index
    %c0_19 = arith.constant 0 : index
    %34 = vector.load %arg10[%c0_18, %c0_19] : memref<1x8xf32, #tpu.memory_space<vmem>>, vector<1x8xf32>
    %35 = vector.broadcast %33 : vector<32x1xf32> to vector<32x8xf32>
    %36 = vector.broadcast %34 : vector<1x8xf32> to vector<32x8xf32>
    %37 = arith.mulf %35, %36 : vector<32x8xf32>
    %c0_20 = arith.constant 0 : index
    %c0_21 = arith.constant 0 : index
    %38 = vector.load %arg11[%c0_20, %c0_21] : memref<1x8xf32, #tpu.memory_space<vmem>>, vector<1x8xf32>
    %39 = vector.broadcast %38 : vector<1x8xf32> to vector<32x8xf32>
    %40 = arith.addf %37, %39 : vector<32x8xf32>
    %41 = math.cos %40 : vector<32x8xf32>
    %c0_22 = arith.constant 0 : index
    %c0_23 = arith.constant 0 : index
    %42 = vector.load %arg12[%c0_22, %c0_23] : memref<8x32xf32, #tpu.memory_space<vmem>>, vector<8x32xf32>
    %cst_24 = arith.constant dense<0.000000e+00> : vector<32x32xf32>
    %43 = tpu.matmul %41, %42, %cst_24 {dimension_numbers = #tpu.dot_dimension_numbers<[1], [0], [0], [1], [0, 0, 1, 1], [], []>} : vector<32x8xf32>, vector<8x32xf32>, vector<32x32xf32> -> vector<32x32xf32>
    %c0_25 = arith.constant 0 : index
    %c0_26 = arith.constant 0 : index
    %44 = vector.load %arg5[%c0_25, %c0_26] : memref<32x16xf32, #tpu.memory_space<vmem>>, vector<32x16xf32>
    %c0_27 = arith.constant 0 : index
    %c0_28 = arith.constant 0 : index
    %45 = vector.load %arg13[%c0_27, %c0_28] : memref<16x32xf32, #tpu.memory_space<vmem>>, vector<16x32xf32>
    %cst_29 = arith.constant dense<0.000000e+00> : vector<32x32xf32>
    %46 = tpu.matmul %44, %45, %cst_29 {dimension_numbers = #tpu.dot_dimension_numbers<[1], [0], [0], [1], [0, 0, 1, 1], [], []>} : vector<32x16xf32>, vector<16x32xf32>, vector<32x32xf32> -> vector<32x32xf32>
    %47 = arith.addf %43, %46 : vector<32x32xf32>
    %48 = vector.extract_strided_slice %28 {offsets = [0, 0], sizes = [32, 32], strides = [1, 1]} : vector<32x65xf32> to vector<32x32xf32>
    %49 = arith.addf %48, %47 : vector<32x32xf32>
    %50 = vector.extract_strided_slice %28 {offsets = [0, 32], sizes = [32, 32], strides = [1, 1]} : vector<32x65xf32> to vector<32x32xf32>
    %51 = arith.addf %50, %47 : vector<32x32xf32>
    %52 = arith.mulf %30, %49 : vector<32x32xf32>
    %c0_30 = arith.constant 0 : index
    %c0_31 = arith.constant 0 : index
    %53 = vector.load %arg14[%c0_30, %c0_31] : memref<32x32xf32, #tpu.memory_space<vmem>>, vector<32x32xf32>
    %cst_32 = arith.constant dense<0.000000e+00> : vector<32x32xf32>
    %54 = tpu.matmul %52, %53, %cst_32 {dimension_numbers = #tpu.dot_dimension_numbers<[1], [0], [0], [1], [0, 0, 1, 1], [], []>} : vector<32x32xf32>, vector<32x32xf32>, vector<32x32xf32> -> vector<32x32xf32>
    %cst_33 = arith.constant 2.500000e-01 : f32
    %55 = vector.broadcast %cst_33 : f32 to vector<32x32xf32>
    %56 = arith.mulf %54, %55 : vector<32x32xf32>
    %cst_34 = arith.constant dense<0xFF800000> : vector<32xf32>
    %57 = vector.multi_reduction <maximumf>, %56, %cst_34 [0] : vector<32x32xf32> to vector<32xf32>
    %58 = vector.shape_cast %57 : vector<32xf32> to vector<1x32xf32>
    %59 = vector.broadcast %58 : vector<1x32xf32> to vector<32x32xf32>
    %60 = arith.subf %56, %59 : vector<32x32xf32>
    %61 = math.exp %60 : vector<32x32xf32>
    %cst_35 = arith.constant dense<0.000000e+00> : vector<8x32xf32>
    %62 = tpu.matmul %27, %61, %cst_35 {dimension_numbers = #tpu.dot_dimension_numbers<[1], [0], [0], [1], [0, 0, 1, 1], [], []>} : vector<8x32xf32>, vector<32x32xf32>, vector<8x32xf32> -> vector<8x32xf32>
    %cst_36 = arith.constant dense<0.000000e+00> : vector<32x32xf32>
    %63 = tpu.matmul %27, %62, %cst_36 {dimension_numbers = #tpu.dot_dimension_numbers<[0], [0], [1], [1], [0, 1, 1, 1], [], []>} : vector<8x32xf32>, vector<8x32xf32>, vector<32x32xf32> -> vector<32x32xf32>
    %cst_37 = arith.constant 0.000000e+00 : f32
    %64 = vector.broadcast %cst_37 : f32 to vector<32x32xf32>
    %65 = arith.cmpf ogt, %63, %64 : vector<32x32xf32>
    %66 = arith.divf %61, %63 : vector<32x32xf32>
    %cst_38 = arith.constant 0.000000e+00 : f32
    %67 = vector.broadcast %cst_38 : f32 to vector<32x32xf32>
    %68 = arith.select %65, %66, %67 : vector<32x32xi1>, vector<32x32xf32>
    %69 = arith.mulf %51, %68 : vector<32x32xf32>
    %cst_39 = arith.constant dense<0.000000e+00> : vector<8x32xf32>
    %70 = tpu.matmul %27, %69, %cst_39 {dimension_numbers = #tpu.dot_dimension_numbers<[1], [0], [0], [1], [0, 0, 1, 1], [], []>} : vector<8x32xf32>, vector<32x32xf32>, vector<8x32xf32> -> vector<8x32xf32>
    %71 = vector.extract_strided_slice %12 {offsets = [0, 32], sizes = [8, 32], strides = [1, 1]} : vector<8x64xf32> to vector<8x32xf32>
    %72 = arith.addf %70, %71 : vector<8x32xf32>
    %c0_40 = arith.constant 0 : index
    %c0_41 = arith.constant 0 : index
    %73 = vector.load %arg15[%c0_40, %c0_41] : memref<8x32xf32, #tpu.memory_space<vmem>>, vector<8x32xf32>
    tpu.vector_store %arg15[%c0_40, %c0_41], %72 {strides = array<i32>} : memref<8x32xf32, #tpu.memory_space<vmem>>, vector<8x32xf32>,
    return
  }
  func.func @transform_0(%arg0: i32) -> (i32, i32) {
    %c0_i32 = arith.constant 0 : i32
    %c0_i32_0 = arith.constant 0 : i32
    %c0_i32_1 = arith.constant 0 : i32
    return %c0_i32, %c0_i32_0 : i32, i32
  }
  func.func @transform_1(%arg0: i32) -> (i32, i32) {
    %c0_i32 = arith.constant 0 : i32
    %c0_i32_0 = arith.constant 0 : i32
    return %arg0, %c0_i32 : i32, i32
  }
  func.func @transform_2(%arg0: i32) -> (i32, i32) {
    %c0_i32 = arith.constant 0 : i32
    %c0_i32_0 = arith.constant 0 : i32
    %c0_i32_1 = arith.constant 0 : i32
    return %c0_i32, %c0_i32_0 : i32, i32
  }
  func.func @transform_3(%arg0: i32) -> (i32, i32) {
    %c0_i32 = arith.constant 0 : i32
    %c0_i32_0 = arith.constant 0 : i32
    %c0_i32_1 = arith.constant 0 : i32
    return %c0_i32, %c0_i32_0 : i32, i32
  }
  func.func @transform_4(%arg0: i32) -> (i32, i32) {
    %c0_i32 = arith.constant 0 : i32
    %c0_i32_0 = arith.constant 0 : i32
    %c0_i32_1 = arith.constant 0 : i32
    return %c0_i32, %c0_i32_0 : i32, i32
  }
  func.func @transform_5(%arg0: i32) -> (i32, i32) {
    %c0_i32 = arith.constant 0 : i32
    %c0_i32_0 = arith.constant 0 : i32
    %c0_i32_1 = arith.constant 0 : i32
    return %c0_i32, %c0_i32_0 : i32, i32
  }
  func.func @transform_6(%arg0: i32) -> (i32, i32) {
    %c0_i32 = arith.constant 0 : i32
    %c0_i32_0 = arith.constant 0 : i32
    %c0_i32_1 = arith.constant 0 : i32
    return %c0_i32, %c0_i32_0 : i32, i32
  }
  func.func @transform_7(%arg0: i32) -> (i32, i32) {
    %c0_i32 = arith.constant 0 : i32
    %c0_i32_0 = arith.constant 0 : i32
    %c0_i32_1 = arith.constant 0 : i32
    return %c0_i32, %c0_i32_0 : i32, i32
  }
  func.func @transform_8(%arg0: i32) -> (i32, i32) {
    %c0_i32 = arith.constant 0 : i32
    %c0_i32_0 = arith.constant 0 : i32
    %c0_i32_1 = arith.constant 0 : i32
    return %c0_i32, %c0_i32_0 : i32, i32
  }
  func.func @transform_9(%arg0: i32) -> (i32, i32) {
    %c0_i32 = arith.constant 0 : i32
    %c0_i32_0 = arith.constant 0 : i32
    %c0_i32_1 = arith.constant 0 : i32
    return %c0_i32, %c0_i32_0 : i32, i32
  }
  func.func @transform_10(%arg0: i32) -> (i32, i32) {
    %c0_i32 = arith.constant 0 : i32
    %c0_i32_0 = arith.constant 0 : i32
    %c0_i32_1 = arith.constant 0 : i32
    return %c0_i32, %c0_i32_0 : i32, i32
  }
  func.func @transform_11(%arg0: i32) -> (i32, i32) {
    %c0_i32 = arith.constant 0 : i32
    %c0_i32_0 = arith.constant 0 : i32
    %c0_i32_1 = arith.constant 0 : i32
    return %c0_i32, %c0_i32_0 : i32, i32
  }
  func.func @transform_12(%arg0: i32) -> (i32, i32) {
    %c0_i32 = arith.constant 0 : i32
    %c0_i32_0 = arith.constant 0 : i32
    %c0_i32_1 = arith.constant 0 : i32
    return %c0_i32, %c0_i32_0 : i32, i32
  }
  func.func @transform_13(%arg0: i32) -> (i32, i32) {
    %c0_i32 = arith.constant 0 : i32
    %c0_i32_0 = arith.constant 0 : i32
    %c0_i32_1 = arith.constant 0 : i32
    return %c0_i32, %c0_i32_0 : i32, i32
  }
  func.func @transform_14(%arg0: i32) -> (i32, i32) {
    %c0_i32 = arith.constant 0 : i32
    %c0_i32_0 = arith.constant 0 : i32
    return %arg0, %c0_i32 : i32, i32
  }
}

</mosaic_0001>

<bundles_post_ra>
// kernel: tpu_custom_call.1
= control target key start
LH: loop header
LB: loop body
LE: loop exit
PB: predicated region body
PF: predicated region fallthrough
CT: control target
= control target key end

     0   :  { %s4009_s0 = inlined_call_operand.hbm [shape: f32[16,33], index: 0, kind: input, shape index: {}]   ;;  %s4010_s1 = inlined_call_operand.hbm [shape: f32[16,33], index: 1, kind: input, shape index: {}]   ;;  %s4011_s2 = inlined_call_operand.vmem [shape: s32[2,32], index: 2, kind: input, shape index: {}]   ;;  %s4012_s3 = inlined_call_operand.vmem [shape: f32[32,1], index: 3, kind: input, shape index: {}]   ;;  %s4013_s4 = inlined_call_operand.vmem [shape: f32[32,16], index: 4, kind: input, shape index: {}]   ;;  %s4014_s5 = inlined_call_operand.vmem [shape: f32[33,65], index: 5, kind: input, shape index: {}]   ;;  %s4015_s6 = inlined_call_operand.hbm [shape: f32[1,65], index: 6, kind: input, shape index: {}]   ;;  %s4016_s7 = inlined_call_operand.vmem [shape: f32[33,64], index: 7, kind: input, shape index: {}]   ;;  %s4017_s8 = inlined_call_operand.hbm [shape: f32[1,64], index: 8, kind: input, shape index: {}]   ;;  %s4018_s9 = inlined_call_operand.hbm [shape: f32[1,8], index: 9, kind: input, shape index: {}]   ;;  %s4019_s10 = inlined_call_operand.hbm [shape: f32[1,8], index: 10, kind: input, shape index: {}]   ;;  %s4020_s11 = inlined_call_operand.vmem [shape: f32[8,32], index: 11, kind: input, shape index: {}]   ;;  %s4021_s12 = inlined_call_operand.hbm [shape: f32[16,32], index: 12, kind: input, shape index: {}]   ;;  %s4022_s13 = inlined_call_operand.vmem [shape: f32[32,32], index: 13, kind: input, shape index: {}]   ;;  %s4023_s14 = inlined_call_operand.hbm [shape: f32[16,32], index: 14, kind: output, shape index: {}]  }
   0x1   :  { %4032 = sst [smem:[#allocation21_spill]] %s4009_s0 }
   0x2   :  { %4033 = sst [smem:[#allocation22_spill]] %s4013_s4 }
   0x3   :  { %4034 = sst [smem:[#allocation23_spill]] %s4015_s6 }
   0x4   :  { %4035 = sst [smem:[#allocation24_spill]] %s4016_s7 }
   0x5   :  { %4036 = sst [smem:[#allocation25_spill]] %s4020_s11 }
   0x6   :  { %4037 = sst [smem:[#allocation26_spill]] %s4022_s13 }
   0x7   :  { %4038 = sst [smem:[#allocation27_spill]] %s4023_s14 }
   0x8   :  { %19 = vsyncpa [#allocation3], 0 }
   0x9   :  { %20 = vsyncpa [#allocation6], 0 }
   0xa   :  { %22 = vsyncpa [#allocation6 + $0x1], 0 }
   0xb   :  { %23 = vsyncpa [#allocation9], 0 }
   0xc   :  { %24 = vsyncpa [#allocation12], 0 }
   0xd   :  { %25 = vsyncpa [#allocation4], 0 }
   0xe   :  { %27 = vsyncpa [#allocation4 + $0x1], 0  ;;  %s3152_s29 = smov 0   ;;  %s3154_s30 = smov 0  }
   0xf   :  { %s3156_s15 = smov 0   ;;  %s3158_s16 = smov 0  }
  0x10 LB: > { %s3054_s17 = smov [#allocation7]   ;;  %s3173_s19 = sadd.s32 4294967295, %s3052_s16   ;;  %s3052_s16 = sphi %s3158_s16, %s4077_s16   ;;  %s3048_s15 = sphi %s3156_s15, %s4076_s15   ;;  %s3044_s30 = sphi %s3154_s30, %s4075_s30   ;;  %s3040_s29 = sphi %s3152_s29, %s4074_s29  }
  0x11   : > { %s401_s18 = sshll.u32 %s3054_s17, 4  ;;  %p2302_p0 = scmp.ge.s32.totalorder %s3052_s16, 1  ;;  %s3178_s18 = int_to_ptr.vmem [resolvable:$true] %s401_s18 }
  0x12   : > { %p4028_p1 = scmp.eq.s32.totalorder %s3173_s19, 0  ;;  %p363_p2 = scmp.lt.s32.totalorder %s3052_s16, 3 }
  0x13   : > { %s3055_s21 = smov [#allocation8]   ;;  %s3056_s23 = smov [#allocation11]  }
  0x14   : > { %p3180_p3 = pnand %p2302_p0, %p363_p2  ;;  %s415_s22 = sshll.u32 %s3055_s21, 4  ;;  %s3187_s22 = int_to_ptr.vmem [resolvable:$true] %s415_s22 }
  0x15   : > { %s437_s24 = sshll.u32 %s3056_s23, 4  ;;  %s3057_s26 = smov [#allocation2]   ;;  %s3195_s24 = int_to_ptr.vmem [resolvable:$true] %s437_s24 }
  0x16   : > { %s4039_s20 = scalar_select %p3180_p3, 1, 0 }
  0x17   : > { %p2634_p5 = pneg %p3180_p3  ;;  %s3197_s27 = sshll.u32 %s3057_s26, 4  ;;  %s376_s27 = int_to_ptr.vmem [resolvable:$true] %s3197_s27 }
  0x18   : > { %s4041_s6 = sld [smem:[#allocation23_spill]] }
  0x19   : > { %p3191_p6 = pnand %p2634_p5, %p4028_p1 }
  0x1b   : > { %p3207_p8 = pneg %p3191_p6 }
  0x1e   : > { %s2772_s14 = scalar_lea.hbm %s4041_s6, 16 }
  0x1f   : > { %p2773_p7 = scmp.ne.s32.totalorder %s4041_s6, %s2772_s14  ;;  %p2779_p11 = scmp.lt.u32.totalorder %s2772_s14, %s4041_s6 }
  0x21   : > { %p2775_p9 = pnand %p3207_p8, %p2773_p7 }
  0x23   : > { %p2776_p10 = pneg %p2775_p9 }
  0x25   : > { %p2781_p12 = pnand %p2779_p11, %p2776_p10 }
  0x27   : > { %2784 = shalt.err (!%p2781_p12)
}
  0x28   : > { %s2785_s13 = scalar_lea.vmem %s3178_s18, 16  ;;  %s2792_s28 = scalar_lea.vmem %s3178_s18, 32 }
  0x29   : > { %p2786_p13 = scmp.ne.s32.totalorder %s3178_s18, %s2785_s13  ;;  %p2793_p5 = scmp.lt.s32.totalorder %s3178_s18, %s3178_s18 }
  0x2a   : > { %p2794_p7 = scmp.lt.s32.totalorder %s2792_s28, %s2785_s13 }
  0x2b   : > { %p2788_p0 = pnand %p2786_p13, %p3207_p8 }
  0x2c   : > { %p2795_p9 = por %p2794_p7, %p2793_p5 }
  0x2d   : > { %p2789_p2 = pneg %p2788_p0 }
  0x2f   : > { %p2796_p4 = pnand %p2795_p9, %p2789_p2 }
  0x31   : > { %2799 = shalt.err (!%p2796_p4)
}
  0x32   : > { %2640 = dma.hbm_to_vmem [thread:$0]  (!%p3191_p6), %s4041_s6, 16, %s3178_s18, [#allocation6]  }
  0x33   : > { %s2800_s26 = scalar_lea.hbm %s4017_s8, 16 }
  0x34   : > { %p2801_p10 = scmp.ne.s32.totalorder %s4017_s8, %s2800_s26  ;;  %p2807_p4 = scmp.lt.u32.totalorder %s2800_s26, %s4017_s8 }
  0x36   : > { %p2803_p11 = pnand %p2801_p10, %p3207_p8 }
  0x38   : > { %p2804_p12 = pneg %p2803_p11 }
  0x3a   : > { %p2809_p13 = pnand %p2807_p4, %p2804_p12 }
  0x3c   : > { %2812 = shalt.err (!%p2809_p13)
}
  0x3d   : > { %s2813_s18 = scalar_lea.vmem %s3187_s22, 16  ;;  %s2820_s4 = scalar_lea.vmem %s3187_s22, 32 }
  0x3e   : > { %p2814_p0 = scmp.ne.s32.totalorder %s3187_s22, %s2813_s18  ;;  %p2821_p7 = scmp.lt.s32.totalorder %s3187_s22, %s3187_s22 }
  0x3f   : > { %p2822_p9 = scmp.lt.s32.totalorder %s2820_s4, %s2813_s18 }
  0x40   : > { %p2816_p2 = pnand %p2814_p0, %p3207_p8 }
  0x41   : > { %p2823_p10 = por %p2822_p9, %p2821_p7 }
  0x42   : > { %p2817_p5 = pneg %p2816_p2 }
  0x44   : > { %p2824_p11 = pnand %p2823_p10, %p2817_p5 }
  0x46   : > { %2827 = shalt.err (!%p2824_p11)
}
  0x47   : > { %2643 = dma.hbm_to_vmem [thread:$0]  (!%p3191_p6), %s4017_s8, 16, %s3187_s22, [#allocation9]  }
  0x48   : > { %s2828_s21 = scalar_lea.hbm %s4019_s10, 16 }
  0x49   : > { %p2829_p12 = scmp.ne.s32.totalorder %s4019_s10, %s2828_s21  ;;  %p2835_p0 = scmp.lt.u32.totalorder %s2828_s21, %s4019_s10 }
  0x4b   : > { %p2831_p4 = pnand %p2829_p12, %p3207_p8 }
  0x4d   : > { %p2832_p13 = pneg %p2831_p4 }
  0x4f   : > { %p2837_p2 = pnand %p2835_p0, %p2832_p13 }
  0x51   : > { %2840 = shalt.err (!%p2837_p2)
}
  0x52   : > { %s2841_s22 = scalar_lea.vmem %s3195_s24, 16  ;;  %s2848_s4 = scalar_lea.vmem %s3195_s24, 32 }
  0x53   : > { %p2842_p5 = scmp.ne.s32.totalorder %s3195_s24, %s2841_s22  ;;  %p2849_p10 = scmp.lt.s32.totalorder %s3195_s24, %s3195_s24 }
  0x54   : > { %p2850_p11 = scmp.lt.s32.totalorder %s2848_s4, %s2841_s22 }
  0x55   : > { %p2844_p7 = pnand %p2842_p5, %p3207_p8 }
  0x56   : > { %p2851_p12 = por %p2850_p11, %p2849_p10 }
  0x57   : > { %p2845_p9 = pneg %p2844_p7 }
  0x59   : > { %p2852_p4 = pnand %p2851_p12, %p2845_p9 }
  0x5b   : > { %2855 = shalt.err (!%p2852_p4)
}
  0x5c   : > { %2649 = dma.hbm_to_vmem [thread:$0]  (!%p3191_p6), %s4019_s10, 16, %s3195_s24, [#allocation12]  }
  0x5d   : > { %s4043_s0 = sld [smem:[#allocation21_spill]] }
  0x63   : > { %s2856_s21 = scalar_lea.hbm %s4043_s0, 256 }
  0x64   : > { %p2857_p13 = scmp.ne.s32.totalorder %s4043_s0, %s2856_s21  ;;  %p2863_p5 = scmp.lt.u32.totalorder %s2856_s21, %s4043_s0 }
  0x66   : > { %p2859_p0 = pnand %p2857_p13, %p3207_p8 }
  0x68   : > { %p2860_p2 = pneg %p2859_p0 }
  0x6a   : > { %p2865_p7 = pnand %p2863_p5, %p2860_p2 }
  0x6c   : > { %2868 = shalt.err (!%p2865_p7)
}
  0x6d   : > { %s2869_s22 = scalar_lea.vmem %s376_s27, 256  ;;  %p2877_p12 = scmp.lt.s32.totalorder %s376_s27, %s376_s27 }
  0x6e   : > { %p2870_p9 = scmp.ne.s32.totalorder %s376_s27, %s2869_s22  ;;  %p2878_p4 = scmp.lt.s32.totalorder %s2869_s22, %s2869_s22 }
  0x70   : > { %p2872_p10 = pnand %p2870_p9, %p3207_p8  ;;  %p2879_p1 = por %p2878_p4, %p2877_p12 }
  0x72   : > { %p2873_p11 = pneg %p2872_p10 }
  0x74   : > { %p2880_p3 = pnand %p2879_p1, %p2873_p11 }
  0x76   : > { %2883 = shalt.err (!%p2880_p3)
}
  0x77   : > { %s3058_s24 = smov 128   ;;  %s3059_s4 = smov 8  }
  0x78   : > { %2637 = dma.hbm_to_vmem [thread:$0]  (!%p3191_p6), %s4043_s0, 256, %s376_s27, [#allocation3], %s3058_s24, %s3058_s24, %s3059_s4  }
  0x79   : > { %s3060_s14 = smov [#allocation10]   ;;  %s3061_s21 = smov [#allocation13]  }
  0x7a   : > { %s426_s17 = sshll.u32 %s3060_s14, 4  ;;  %s450_s26 = sshll.u32 %s3061_s21, 4  ;;  %s427_s17 = int_to_ptr.vmem [resolvable:$true] %s426_s17  ;;  %s3299_s26 = int_to_ptr.vmem [resolvable:$true] %s450_s26 }
  0x7b   : > { %s2884_s18 = scalar_lea.hbm %s4018_s9, 16 }
  0x7c   : > { %p2885_p1 = scmp.ne.s32.totalorder %s4018_s9, %s2884_s18  ;;  %p2891_p0 = scmp.lt.u32.totalorder %s2884_s18, %s4018_s9 }
  0x7e   : > { %p2887_p3 = pnand %p2885_p1, %p3207_p8 }
  0x80   : > { %p2888_p13 = pneg %p2887_p3 }
  0x82   : > { %p2893_p2 = pnand %p2891_p0, %p2888_p13 }
  0x84   : > { %2896 = shalt.err (!%p2893_p2)
}
  0x85   : > { %s2897_s11 = scalar_lea.vmem %s427_s17, 16  ;;  %s2904_s14 = scalar_lea.vmem %s427_s17, 32 }
  0x86   : > { %p2898_p5 = scmp.ne.s32.totalorder %s427_s17, %s2897_s11  ;;  %p2905_p10 = scmp.lt.s32.totalorder %s427_s17, %s427_s17 }
  0x87   : > { %p2906_p11 = scmp.lt.s32.totalorder %s2904_s14, %s2897_s11 }
  0x88   : > { %p2900_p7 = pnand %p2898_p5, %p3207_p8 }
  0x89   : > { %p2907_p12 = por %p2906_p11, %p2905_p10 }
  0x8a   : > { %p2901_p9 = pneg %p2900_p7 }
  0x8c   : > { %p2908_p4 = pnand %p2907_p12, %p2901_p9 }
  0x8e   : > { %2911 = shalt.err (!%p2908_p4)
}
  0x8f   : > { %2646 = dma.hbm_to_vmem [thread:$0]  (!%p3191_p6), %s4018_s9, 16, %s427_s17, [#allocation9]  }
  0x90   : > { %s2912_s18 = scalar_lea.hbm %s4021_s12, 256 }
  0x91   : > { %p2913_p1 = scmp.ne.s32.totalorder %s4021_s12, %s2912_s18  ;;  %p2919_p0 = scmp.lt.u32.totalorder %s2912_s18, %s4021_s12 }
  0x93   : > { %p2915_p3 = pnand %p2913_p1, %p3207_p8 }
  0x95   : > { %p2916_p13 = pneg %p2915_p3 }
  0x97   : > { %p2921_p2 = pnand %p2919_p0, %p2916_p13 }
  0x99   : > { %2924 = shalt.err (!%p2921_p2)
}
  0x9a   : > { %s2925_s17 = scalar_lea.vmem %s3299_s26, 256  ;;  %p2933_p10 = scmp.lt.s32.totalorder %s3299_s26, %s3299_s26 }
  0x9b   : > { %p2926_p5 = scmp.ne.s32.totalorder %s3299_s26, %s2925_s17  ;;  %p2934_p11 = scmp.lt.s32.totalorder %s2925_s17, %s2925_s17 }
  0x9d   : > { %p2928_p7 = pnand %p2926_p5, %p3207_p8  ;;  %p2935_p12 = por %p2934_p11, %p2933_p10 }
  0x9f   : > { %p2929_p9 = pneg %p2928_p7 }
  0xa1   : > { %p2936_p4 = pnand %p2935_p12, %p2929_p9 }
  0xa3   : > { %2939 = shalt.err (!%p2936_p4)
}
  0xa4   : > { %2652 = dma.hbm_to_vmem [thread:$0]  (!%p3191_p6), %s4021_s12, 256, %s3299_s26, [#allocation12], %s3058_s24, %s3058_s24, %s3059_s4  }
  0xa5   : > { %s2301_s25 = sadd.s32 4294967294, %s3052_s16   ;;  %s3347_s23 = sadd.s32 1, %s3052_s16  }
  0xa6   : > { %s58_s21 = ssub.s32 %s3052_s16, %s3347_s23  ;;  %s61_s13 = sadd.s32 1, %s3048_s15 }
  0xa7   : > { %p59_p8 = scmp.eq.s32.totalorder %s58_s21, 0  ;;  %p68_p1 = scmp.ne.s32.totalorder %s3048_s15, %s3044_s30 }
  0xa8   : > { %p69_p3 = scmp.eq.s32.totalorder %s3052_s16, 0  ;;  %p74_p13 = scmp.ne.s32.totalorder %s3044_s30, %s3040_s29 }
  0xa9   : > { %s3358_s28 = scalar_select %p59_p8, %s3048_s15, %s61_s13  }
  0xaa   : > { %p3360_p0 = por %p69_p3, %p68_p1  ;;  %p4045_p2 = scmp.eq.s32.totalorder %s3173_s19, 0 }
  0xab   : > { %p350_p5 = scmp.eq.s32.totalorder %s3173_s19, 1  ;;  %p356_p7 = scmp.eq.s32.totalorder %s2301_s25, 1 }
  0xac   : > { %p3366_p6 = por %p4045_p2, %p74_p13  ;;  %p2667_p9 = scmp.lt.s32.totalorder %s3052_s16, 2 }
  0xad   : > { %s467_s4 = sand.u32 1, %s3052_s16   ;;  %p3373_p10 = por %p350_p5, %p68_p1 }
  0xae   : > { %p3377_p11 = por %p356_p7, %p74_p13  ;;  %s469_s7 = sand.u32 1, %s3048_s15  }
  0xaf   : > { %s4047_s26 = scalar_select %p3373_p10, 1, 0 }
  0xb0   : > { %s4048_s22 = scalar_select %p3377_p11, 1, 0 }
  0xb1   : > { %s2310_s27 = sshll.u32 %s469_s7, 3  ;;  %s2311_s11 = sshll.u32 %s3052_s16, 7 }
  0xb2   : > { %s3386_s6 = scalar_lea.hbm %s4010_s1, %s2311_s11  ;;  %s471_s25 = scalar_lea.vmem [#allocation5], %s2310_s27 }
  0xb3   : > { %s478_s21 = sshll.u32 %s471_s25, 4  ;;  %p3390_p12 = pnand %p2667_p9, %p3360_p0  ;;  %s3394_s21 = int_to_ptr.vmem [resolvable:$true] %s478_s21 }
  0xb4   : > { %s468_s7 = scalar_lea.sflag [#allocation6], %s467_s4  ;;  %s2940_s0 = scalar_lea.hbm %s3386_s6, 128 }
  0xb5   : > { %p2941_p4 = scmp.ne.s32.totalorder %s3386_s6, %s2940_s0  ;;  %p2942_p8 = pneg %p3390_p12 }
  0xb6   : > { %s2945_s18 = scalar_lea.hbm %s4010_s1, 256  ;;  %p2946_p13 = scmp.lt.u32.totalorder %s3386_s6, %s4010_s1 }
  0xb7   : > { %p2943_p1 = pnand %p2942_p8, %p2941_p4  ;;  %p2947_p0 = scmp.lt.u32.totalorder %s2945_s18, %s2940_s0 }
  0xb8   : > { %p2949_p5 = scmp.lt.u32.totalorder %s2940_s0, %s3386_s6 }
  0xb9   : > { %p2944_p3 = pneg %p2943_p1  ;;  %p2948_p2 = por %p2947_p0, %p2946_p13 }
  0xbb   : > { %p2950_p7 = por %p2949_p5, %p2948_p2 }
  0xbd   : > { %p2951_p9 = pnand %p2950_p7, %p2944_p3 }
  0xbf   : > { %2954 = shalt.err (!%p2951_p9)
}
  0xc0   : > { %s2955_s4 = scalar_lea.vmem %s3394_s21, 128  ;;  %s3062_s25 = smov [#allocation5]  }
  0xc1   : > { %p2956_p4 = scmp.ne.s32.totalorder %s3394_s21, %s2955_s4  ;;  %s2960_s27 = sshll.u32 %s3062_s25, 4  ;;  %s2961_s27 = int_to_ptr.vmem [resolvable:$false] %s2960_s27 }
  0xc2   : > { %s2962_s11 = scalar_lea.vmem %s2961_s27, 256  ;;  %p2963_p10 = scmp.lt.s32.totalorder %s3394_s21, %s2961_s27 }
  0xc3   : > { %p2958_p1 = pnand %p2956_p4, %p2942_p8  ;;  %p2964_p13 = scmp.lt.s32.totalorder %s2962_s11, %s2955_s4 }
  0xc5   : > { %p2959_p11 = pneg %p2958_p1  ;;  %p2965_p0 = por %p2964_p13, %p2963_p10 }
  0xc7   : > { %p2966_p2 = pnand %p2965_p0, %p2959_p11 }
  0xc9   : > { %2969 = shalt.err (!%p2966_p2)
}
  0xca   : > { %2656 = dma.hbm_to_vmem [thread:$0]  (!%p3390_p12), %s3386_s6, 128, %s3394_s21, %s468_s7  }
  0xcb   : > { %p4050_p3 = scmp.ne.s32.totalorder %s4039_s20, 0 }
  0xcc   : > { %p4051_p8 = scmp.eq.s32.totalorder (!%p4050_p3), %s3173_s19, 0 }
  0xcd   : > { %487 = sbr.rel (%p4050_p3) target bundleno = 2334 (0x91e), region = 76 }
  0xd4   : > { %3015 = dma.done.wait (%p4051_p8), [#allocation3], 256   ;;  %p4052_p5 = pmov %p4051_p8 }
  0xd5   : > { %s493_s0 = sand.u32 1, %s3173_s19   ;;  %s4031_s18 = sand.u32 1, %s3044_s30  }
  0xd6   : > { %3017 = vsyncadd (%p4052_p5), [#allocation3], 4294967040  ;;  %s3431_s13 = sshll.u32 %s4031_s18, 3  ;;  %s494_s6 = scalar_lea.sflag [#allocation6], %s493_s0 }
  0xd7   : > { %s497_s21 = scalar_lea.vmem [#allocation5], %s3431_s13 }
  0xd8   : > { %3019 = dma.done.wait (%p3366_p6), %s494_s6, 128  }
  0xd9   : > { %3021 = vsyncadd (%p3366_p6), %s494_s6, 4294967168  ;;  %p4053_p10 = pmov %p4052_p5 }
  0xda   : > { %p4054_p11 = pmov %p4052_p5 }
  0xdb   : > { %3023 = dma.done.wait (%p4053_p10), [#allocation6], 16  }
  0xdc   : > { %3025 = vsyncadd (%p4054_p11), [#allocation6], 4294967280  ;;  %p4055_p12 = pmov %p4052_p5 }
  0xdd   : > { %p4056_p7 = pmov %p4052_p5 }
  0xde   : > { %3027 = dma.done.wait (%p4055_p12), [#allocation9], 32  }
  0xdf   : > { %3029 = vsyncadd (%p4056_p7), [#allocation9], 4294967264  ;;  %p4057_p9 = pmov %p4052_p5 }
  0xe0   : > { %p4058_p4 = pmov %p4052_p5 }
  0xe1   : > { %3031 = dma.done.wait (%p4057_p9), [#allocation12], 272  }
  0xe2   : > { %3033 = vsyncadd (%p4058_p4), [#allocation12], 4294967024  ;;  %v753_v0 = vlaneseq  ;;  %vm577_vm0 = vcmask 269312   ;;  %v565_v3 = vld [vmem:[%s4014_s5] sm:$0xff]  ;;  %v566_v4 = vld [vmem:[%s4014_s5 + $0x8] sm:$0xff]  ;;  %vm584_vm3 = vcmask 1040384  }
  0xe3   : > { %v567_v5 = vld [vmem:[%s4014_s5 + $0x10] sm:$0xff]  ;;  %v2544_v6 = vpack.c.bf16 %v566_v4, %v565_v3  ;;  %v568_v7 = vld [vmem:[%s4014_s5 + $0x18] sm:$0xff]  ;;  %v563_v8 = vld [vmem:[#allocation2] sm:$0xff]  ;;  %v3063_v14 = vmov 0.0   ;;  %s3064_s17 = smov 64   ;;  %v3065_v20 = vmov 0.0|0.0  }
  0xe4   : > { %v3450_v1 = vshrl.u32 %v753_v0, 7  ;;  %v2548_v10 = vpack.c.bf16 %v568_v7, %v567_v5  ;;  %2448 = vmatprep.mubr.msk.f32.mxu0 %vm577_vm0, %v563_v8  ;;  %v3470_v11 = vld [vmem:[%s4011_s2] sm:$0x3]  ;;  %v564_v17 = vld [vmem:[#allocation2 + $0x8] sm:$0xff]  ;;  %v1037_v19 = vld [vmem:[%s4012_s3 + $0x10] sm:$0xff]  ;;  %2552 = vmatprep.subr.bf16.mxu1 %v3065_v20  ;;  %s4059_s11 = sld [smem:[#allocation24_spill]] }
  0xe5   : > { %2545 = vmatprep.subr.bf16.mxu0 %v2544_v6  ;;  %v569_v13 = vld [vmem:[%s4014_s5 + $0x20] sm:$0x1]  ;;  %v1036_v23 = vld [vmem:[%s4012_s3 + $0x8] sm:$0xff]  ;;  %v1038_v28 = vld [vmem:[%s4012_s3 + $0x18] sm:$0xff]  ;;  %vm807_vm4 = vcmask 130048   ;;  %v3066_v39 = vmov 64  }
  0xe6   : > { %v758_v2 = vsub.s32 0, %v3450_v1  ;;  %v755_v9 = vadd.s32 8, %v3450_v1  ;;  %2547 = vmatpush3.bf16.msra.mxu0 %v2544_v6  ;;  %v1035_v18 = vld [vmem:[%s4012_s3] sm:$0xff]  ;;  %2728 = vset.pattern.permute.xlu1 %v3066_v39  ;;  %vm3067_vm5 = vmmov 0   ;;  %v663_v41 = vld [vmem:[%s497_s21] sm:$0xff]  ;;  %s2321_s21 = sshll.u32 %s3173_s19, 3 }
  0xe7   : > { %2549 = vmatprep.subr.bf16.mxu0 %v2548_v10  ;;  %1043 = vrot.lane.b32.xlu1 %v1035_v18, %s3064_s17  ;;  %v2322_v30 = vld [vmem:[#allocation7] ss:$0 sm:$0xff]  ;;  %v770_v54 = vsub.s32 1, %v3450_v1  ;;  %v766_v55 = vstv %s2321_s21  ;;  %v1518_v59 = vld [vmem:[#allocation13] sm:$0xff]  ;;  %v1519_v60 = vld [vmem:[#allocation13 + $0x8] sm:$0xff]  ;;  %s4060_s20 = sld [smem:[#allocation22_spill]] }
  0xe8   : > { %v759_v12 = vrot.slane %v3470_v11, %v758_v2  ;;  %2461 = vmatprep.mubr.msk.f32.mxu1 %vm3067_vm5, %v3063_v14  ;;  %v767_v56 = vadd.s32 %v766_v55, %v3450_v1  ;;  %v2562_v62 = vpack.c.bf16 %v1519_v60, %v1518_v59  ;;  %s4061_s14 = sld [smem:[#allocation25_spill]]  ;;  %v2326_v3 = vld [vmem:[#allocation8] ss:$0 sm:$0xff]  ;;  %v2340_v7 = vld [vmem:[#allocation10] ss:$0 sm:$0xff]  ;;  %s4064_s24 = sld [smem:[#allocation26_spill]] }
  0xe9   : > { %v771_v57 = vrot.slane %v3470_v11, %v770_v54  ;;  %v2341_v8 = vld [vmem:[#allocation11] ss:$0 sm:$0xff]  ;;  %v3071_v54 = vmov 2102212464   ;;  %s3075_s21 = smov 96   ;;  %s2377_s0 = sshll.u32 %s3173_s19, 7 }
  0xea   : > { %vm760_vm1 = vcmp.eq.s32.totalorder %v3450_v1, %v759_v12  ;;  %vm761_vm2 = vcmp.eq.s32.totalorder %v755_v9, %v759_v12  ;;  %2551 = vmatpush3.bf16.msra.mxu0 %v2548_v10  ;;  %v664_v21 = vld [vmem:[%s4059_s11] sm:$0xff]  ;;  %v665_v22 = vld [vmem:[%s4059_s11 + $0x8] sm:$0xff]  ;;  %v666_v25 = vld [vmem:[%s4059_s11 + $0x10] sm:$0xff]  ;;  %s561_s6 = scalar_lea.vmem [#allocation14], %s3431_s13  ;;  %s4069_s25 = sld [smem:[#allocation27_spill]] }
  0xeb   : > { %v2329_v15 = vsel %vm760_vm1, 1.0, %v3063_v14  ;;  %v2330_v16 = vsel %vm761_vm2, 1.0, %v3063_v14  ;;  %2446 = vmatprep.subr.msk.mxu0 %vm584_vm3, %v569_v13  ;;  %v2553_v24 = vpack.c.bf16 %v665_v22, %v664_v21  ;;  %v667_v26 = vld [vmem:[%s4059_s11 + $0x18] sm:$0xff]  ;;  %1045 = vrot.lane.b32.xlu1 %v1036_v23, %s3064_s17  ;;  %v668_v40 = vld [vmem:[%s4059_s11 + $0x20] sm:$0x1]  ;;  %vm772_vm6 = vcmp.eq.s32.totalorder %v767_v56, %v771_v57  ;;  %s2172_s7 = sshll.u32 %s561_s6, 4  ;;  %s3965_s7 = int_to_ptr.vmem [resolvable:$true] %s2172_s7 }
  0xec   : > { %775 = vxpose.xlu0.b32.start [1/2] (short) (narrow) %v2329_v15, 32  ;;  %v2556_v27 = vpack.c.bf16 %v667_v26, %v666_v25  ;;  %v3539_v58 = vsel %vm772_vm6, 1.0, %v3063_v14  ;;  %v3072_v57 = vmov 920167782   ;;  %s4070_s18 = sand.u32 1, %s3044_s30   ;;  %s2970_s13 = scalar_lea.vmem %s3965_s7, 128 }
  0xed   : > { %2554 = vmatpush3.bf16.msra.mxu1 %v2553_v24  ;;  %v1514_v61 = vld [vmem:[%s4060_s20] sm:$0xff]  ;;  %v1515_v0 = vld [vmem:[%s4060_s20 + $0x8] sm:$0xff]  ;;  %v1516_v1 = vld [vmem:[%s4060_s20 + $0x10] sm:$0xff]  ;;  %s2159_s19 = scalar_lea.sflag [#allocation4], %s4070_s18  ;;  %p2971_p6 = scmp.ne.s32.totalorder %s3965_s7, %s2970_s13 }
  0xee   : > { %2447 = vmatpush3.msk.msra.mxu0 %vm584_vm3, %v569_v13  ;;  %2555 = vmatprep.subr.bf16.mxu1 %v3065_v20  ;;  %v1513_v63 = vld [vmem:[%s4061_s14] sm:$0xff]  ;;  %v1517_v2 = vld [vmem:[%s4060_s20 + $0x18] sm:$0xff]  ;;  %p4071_p1 = scmp.ne.s32.totalorder %s4047_s26, 0 }
  0xef   : > { %2449 = vmatmul.mubr.msk.f32.vlgmr.msra.gmra.mrb[0].mxu0 %vm577_vm0, %v564_v17  ;;  %1049 = vrot.lane.b32.xlu1 %v1038_v28, %s3064_s17 }
  0xf0   : > { %776 = vxpose.xlu0.b32.end [2/2] (short) (narrow) %v2330_v16, 32  ;;  %s3963_s27 = scalar_lea.hbm %s4069_s25, %s2377_s0  ;;  %p2972_p13 = pnand %p2971_p6, %p4071_p1 }
  0xf1   : > { %2557 = vmatpush3.bf16.msra.mxu1 %v2556_v27 }
  0xf2   : > { %2459 = vmatprep.subr.mxu1 %v3063_v14  ;;  %p2973_p0 = pneg %p2972_p13 }
  0xf5   : > { %2460 = vmatpush3.msk.msra.mxu1 %vm584_vm3, %v668_v40 }
  0xf6   : > { %2462 = vmatmul.mubr.msk.f32.vlgmr.msra.gmra.mrb[0].mxu1 %vm577_vm0, %v663_v41  ;;  %v3068_v41 = vmov 683565275  }
 0x119   : > { %2739 = vset.pattern.permute.xlu0 %v3066_v39 }
 0x121   : > { %1047 = vrot.lane.b32.xlu0 %v1037_v19, %s3064_s17  ;;  %s3074_s17 = smov 32  }
 0x159   : > { %v1044_v42 = vpop.permute.xlu1 %1043 }
 0x15d   : > { %v1046_v43 = vpop.permute.xlu1 %1045 }
 0x161   : > { %v1050_v52 = vpop.permute.xlu1 %1049 }
 0x16c   : > { %v791_v29 = vpop.trf.xlu0 }
 0x16d   : > { %2468 = vmatprep.mubr.msk.f32.mxu0 %vm807_vm4, %v791_v29 }
 0x170   : > { %v792_v31 = vpop.trf.xlu0 }
 0x174   : > { %v793_v37 = vpop.trf.xlu0 }
 0x178   : > { %v794_v38 = vpop.trf.xlu0 }
 0x193   : > { %v1048_v48 = vpop.permute.xlu0 %1047 }
 0x1c2   : > { %v2450_v32 = vpop.f32.mrb[0].mxu0 }
 0x1c3   : > { %v660_v33 = vadd.f32 %v2450_v32, %v2322_v30  ;;  %v654_v34 = vpop.f32.mrb[1].mxu0 }
 0x1c4   : > { %v655_v35 = vadd.f32 %v2322_v30, %v654_v34 }
 0x1c6   : > { %v2558_v36 = vpack.c.bf16 %v660_v33, %v655_v35 }
 0x1c8   : > { %2559 = vmatprep.subr.bf16.mxu0 %v2558_v36 }
 0x1c9   : > { %2561 = vmatpush3.bf16.msra.mxu0 %v2558_v36  ;;  %v748_v4 = vpop.f32.mrb[0].mxu1 }
 0x1ca   : > { %2563 = vmatprep.subr.bf16.mxu0 %v2562_v62  ;;  %v3562_v5 = vadd.f32 %v2326_v3, %v748_v4  ;;  %v2463_v6 = vpop.f32.mrb[1].mxu1 }
 0x1cc   : > { %2469 = vmatmul.mubr.msk.f32.vlgmr.msra.gmra.mrb[2].mxu0 %vm807_vm4, %v792_v31  ;;  %2474 = vmatprep.subr.mxu1 %v3562_v5 }
 0x1cd   : > { %2471 = vmatprep.mubr.msk.f32.mxu0 %vm807_vm4, %v793_v37  ;;  %2565 = vmatpush3.bf16.msra.mxu0 %v2562_v62 }
 0x1ce   : > { %2492 = vmatprep.subr.mxu0 %v1513_v63  ;;  %2475 = vmatpush3.msra.mxu1 %v3562_v5 }
 0x1d0   : > { %2472 = vmatmul.mubr.msk.f32.gmra.mrb[4].mxu0 %vm807_vm4, %v794_v38 }
 0x1d1   : > { %2486 = vmatprep.mubr.msk.f32.mxu0 %vm807_vm4, %v1514_v61  ;;  %v3073_v61 = vmov 1326507024  }
 0x1d4   : > { %2487 = vmatmul.mubr.msk.f32.vlgmr.msra.gmra.mrb[6].mxu0 %vm807_vm4, %v1515_v0 }
 0x1d5   : > { %2489 = vmatprep.mubr.msk.f32.mxu0 %vm807_vm4, %v1516_v1  ;;  %2493 = vmatpush3.msra.mxu0 %v1513_v63 }
 0x1d6   : > { %2580 = vmatprep.subr.bf16.mxu0 %v3065_v20 }
 0x1d8   : > { %2490 = vmatmul.mubr.msk.f32.gmra.mrb[8].mxu0 %vm807_vm4, %v1517_v2  ;;  %vm937_vm4 = vcmask 64512  }
 0x29f   : > { %v3522_v44 = vpop.f32.mrb[2].mxu0 }
 0x2a0   : > { %v1056_v45 = vsub.f32 %v3522_v44, %v1046_v43  ;;  %v3525_v46 = vpop.f32.mrb[3].mxu0  ;;  %v3069_v43 = vmov 2475754826  }
 0x2a1   : > { %v1055_v49 = vsub.f32 %v3525_v46, %v1044_v42 }
 0x2a2   : > { %1067 = vperm.xlu1 %2728, %v1056_v45  }
 0x2a3   : > { %v3527_v47 = vpop.f32.mrb[4].mxu0 }
 0x2a4   : > { %v3530_v50 = vpop.f32.mrb[5].mxu0  ;;  %v1058_v53 = vsub.f32 %v3527_v47, %v1050_v52 }
 0x2a5   : > { %v1057_v51 = vsub.f32 %v3530_v50, %v1048_v48  ;;  %v3070_v48 = vmov 2131351028  }
 0x2a6   : > { %1062 = vperm.xlu1 %2728, %v1055_v49  }
 0x2aa   : > { %1072 = vperm.xlu1 %2728, %v1057_v51  }
 0x2ae   : > { %1077 = vperm.xlu1 %2728, %v1058_v53  }
 0x2d7   : > { %905 = vxpose.xlu1.b32.start.end [1/1] (short) (narrow) %v3539_v58, 32 }
 0x321   : > { %v1068_v9 = vpop.permute.xlu1 %1067 }
 0x322   : > { %v1087_v10 = vmul.f32 %v2340_v7, %v1068_v9 }
 0x324   : > { %v3566_v11 = vadd.f32 %v2341_v8, %v1087_v10 }
 0x325   : > { %v1063_v12 = vpop.permute.xlu1 %1062 }
 0x326   : > { %v1204_v13 = vand.u32 2147483647, %v3566_v11  ;;  %v1207_v15 = vand.u32 2139095040, %v3566_v11  ;;  %v1086_v16 = vmul.f32 %v2340_v7, %v1063_v12 }
 0x328   : > { %v1208_v17 = vshrl.u32 %v1207_v15, 23  ;;  %v3570_v18 = vadd.f32 %v2341_v8, %v1086_v16  ;;  %v1211_v22 = vand.u32 8388607, %v1204_v13 }
 0x329   : > { %v1073_v19 = vpop.permute.xlu1 %1072 }
 0x32a   : > { %v2346_v21 = vadd.s32 4294967169, %v1208_v17  ;;  %v1104_v23 = vand.u32 2139095040, %v3570_v18  ;;  %v1088_v24 = vmul.f32 %v2340_v7, %v1073_v19  ;;  %v1212_v29 = vor.u32 8388608, %v1211_v22 }
 0x32b   : > { %v1101_v36 = vand.u32 2147483647, %v3570_v18 }
 0x32c   : > { %v1214_v25 = vadd.s32 1, %v2346_v21  ;;  %v1105_v26 = vshrl.u32 %v1104_v23, 23  ;;  %v3575_v27 = vadd.f32 %v2341_v8, %v1088_v24  ;;  %v3579_v38 = vshll.u32 %v1212_v29, 8 }
 0x32d   : > { %v1078_v28 = vpop.permute.xlu1 %1077 }
 0x32e   : > { %vm1215_vm7 = vcmp.gt.s32.totalorder %v1214_v25, 0  ;;  %v2342_v30 = vadd.s32 4294967169, %v1105_v26  ;;  %v1310_v31 = vand.u32 2139095040, %v3575_v27  ;;  %v1089_v33 = vmul.f32 %v2340_v7, %v1078_v28 }
 0x32f   : > { %v1216_v32 = vsel %vm1215_vm7, %v1214_v25, 0 }
 0x330   : > { %v1218_v34 = vand.u32 31, %v1216_v32  ;;  %v1217_v35 = vshrl.u32 %v1216_v32, 5  ;;  %v1111_v39 = vadd.s32 1, %v2342_v30  ;;  %v1311_v40 = vshrl.u32 %v1310_v31, 23 }
 0x331   : > { %v3584_v51 = vadd.f32 %v2341_v8, %v1089_v33 }
 0x332   : > { %v1219_v37 = vsub.s32 32, %v1218_v34  ;;  %v1221_v42 = vshll.u32 %v3068_v41, %v1218_v34  ;;  %v1224_v45 = vshll.u32 %v3069_v43, %v1218_v34  ;;  %v1227_v49 = vshll.u32 %v3070_v48, %v1218_v34 }
 0x333   : > { %v1230_v56 = vshll.u32 %v3071_v54, %v1218_v34  ;;  %v1233_v60 = vshll.u32 %v3072_v57, %v1218_v34  ;;  %vm1236_vm8 = vcmp.lt.s32.totalorder %v1217_v35, 1  ;;  %vm1112_vm9 = vcmp.gt.s32.totalorder %v1111_v39, 0 }
 0x334   : > { %v1222_v52 = vshrl.u32 %v3069_v43, %v1219_v37  ;;  %v1225_v53 = vshrl.u32 %v3070_v48, %v1219_v37  ;;  %v1228_v55 = vshrl.u32 %v3071_v54, %v1219_v37  ;;  %v1231_v59 = vshrl.u32 %v3072_v57, %v1219_v37 }
 0x335   : > { %v1234_v62 = vshrl.u32 %v3073_v61, %v1219_v37  ;;  %vm1239_vm10 = vcmp.lt.s32.totalorder %v1217_v35, 4  ;;  %v1113_v4 = vsel %vm1112_vm9, %v1111_v39, 0  ;;  %v1220_v6 = vshrl.u32 %v3068_v41, %v1219_v37 }
 0x336   : > { %v1223_v63 = vor.u32 %v1222_v52, %v1221_v42  ;;  %v1226_v0 = vor.u32 %v1225_v53, %v1224_v45  ;;  %v1229_v1 = vor.u32 %v1228_v55, %v1227_v49  ;;  %v1232_v2 = vor.u32 %v1231_v59, %v1230_v56 }
 0x337   : > { %v1235_v3 = vor.u32 %v1234_v62, %v1233_v60  ;;  %vm1238_vm11 = vcmp.lt.s32.totalorder %v1217_v35, 3  ;;  %v2350_v15 = vadd.s32 4294967169, %v1311_v40  ;;  %vm1237_vm12 = vcmp.lt.s32.totalorder %v1217_v35, 2 }
 0x338   : > { %v1241_v7 = vsel %vm1239_vm10, %v1229_v1, 2102212464  ;;  %v1244_v8 = vsel %vm1236_vm8, %v1223_v63, %v1226_v0  ;;  %v1248_v9 = vsel %vm1236_vm8, %v1226_v0, %v1229_v1  ;;  %v1245_v10 = vsel %vm1239_vm10, %v1232_v2, 920167782 }
 0x339   : > { %v1249_v12 = vsel %vm1239_vm10, %v1235_v3, 1326507024  ;;  %v1246_v16 = vsel %vm1238_vm11, %v1229_v1, %v1245_v10  ;;  %v1115_v19 = vand.u32 31, %v1113_v4  ;;  %v1240_v21 = vsel %vm1236_vm8, %v1220_v6, %v1223_v63 }
 0x33a   : > { %v1250_v17 = vsel %vm1238_vm11, %v1232_v2, %v1249_v12  ;;  %v1242_v22 = vsel %vm1238_vm11, %v1226_v0, %v1241_v7  ;;  %v1247_v23 = vsel %vm1237_vm12, %v1244_v8, %v1246_v16  ;;  %v1317_v31 = vadd.s32 1, %v2350_v15 }
 0x33b   : > { %v1251_v24 = vsel %vm1237_vm12, %v1248_v9, %v1250_v17  ;;  %v3602_v28 = vmul.u32.u64.low %v3579_v38, %v1247_v23  ;;  %v3603_v29 = vmul.u32.u64.high %v3579_v38, %v1247_v23, %v3602_v28  ;;  %v1116_v30 = vsub.s32 32, %v1115_v19 }
 0x33c   : > { %v3598_v25 = vmul.u32.u64.low %v3579_v38, %v1251_v24  ;;  %v3599_v26 = vmul.u32.u64.high %v3579_v38, %v1251_v24, %v3598_v25  ;;  %v1243_v32 = vsel %vm1237_vm12, %v1240_v21, %v1242_v22  ;;  %v1413_v33 = vand.u32 2139095040, %v3584_v51 }
 0x33d   : > { %v1128_v34 = vshrl.u32 %v3072_v57, %v1116_v30  ;;  %vm1318_vm13 = vcmp.gt.s32.totalorder %v1317_v31, 0  ;;  %v1262_v35 = vadd.s32 1, %v3603_v29  ;;  %v1108_v39 = vand.u32 8388607, %v1101_v36 }
 0x33e   : > { %vm1261_vm14 = vc.u32 %v3599_v26, %v3602_v28  ;;  %v1319_v37 = vsel %vm1318_vm13, %v1317_v31, 0  ;;  %v1259_v40 = vmul.u32 %v3579_v38, %v1243_v32  ;;  %v1114_v42 = vshrl.u32 %v1113_v4, 5 }
 0x33f   : > { %v1127_v45 = vshll.u32 %v3071_v54, %v1115_v19  ;;  %v1131_v49 = vshrl.u32 %v3073_v61, %v1116_v30  ;;  %v1263_v52 = vsel %vm1261_vm14, %v1262_v35, %v3603_v29  ;;  %v1414_v53 = vshrl.u32 %v1413_v33, 23 }
 0x340   : > { %v1119_v55 = vshrl.u32 %v3069_v43, %v1116_v30  ;;  %v1122_v56 = vshrl.u32 %v3070_v48, %v1116_v30  ;;  %v1264_v59 = vadd.s32 %v1263_v52, %v1259_v40  ;;  %v1130_v62 = vshll.u32 %v3072_v57, %v1115_v19 }
 0x341   : > { %v1129_v60 = vor.u32 %v1128_v34, %v1127_v45  ;;  %v3620_v63 = vand.u32 31, %v1319_v37  ;;  %v2354_v0 = vadd.s32 4294967169, %v1414_v53  ;;  %v1118_v38 = vshll.u32 %v3068_v41, %v1115_v19 }
 0x342   : > { %v1121_v1 = vshll.u32 %v3069_v43, %v1115_v19  ;;  %v1265_v2 = vadd.s32 536870912, %v1264_v59  ;;  %v1132_v3 = vor.u32 %v1131_v49, %v1130_v62  ;;  %vm1136_vm15 = vcmp.lt.s32.totalorder %v1114_v42, 4 }
 0x343   : > { %v1109_v4 = vor.u32 8388608, %v1108_v39  ;;  %v1120_v6 = vor.u32 %v1119_v55, %v1118_v38  ;;  %v1124_v8 = vshll.u32 %v3070_v48, %v1115_v19  ;;  %v1125_v9 = vshrl.u32 %v3071_v54, %v1116_v30 }
 0x344   : > { %v1123_v7 = vor.u32 %v1122_v56, %v1121_v1  ;;  %v3626_v10 = vshrl.u32 %v1265_v2, 30  ;;  %v1142_v12 = vsel %vm1136_vm15, %v1129_v60, 920167782  ;;  %v3630_v15 = vsub.s32 32, %v3620_v63 }
 0x345   : > { %v1420_v16 = vadd.s32 1, %v2354_v0  ;;  %v1126_v17 = vor.u32 %v1125_v9, %v1124_v8  ;;  %v1146_v22 = vsel %vm1136_vm15, %v1132_v3, 1326507024  ;;  %vm1133_vm0 = vcmp.lt.s32.totalorder %v1114_v42, 1 }
 0x346   : > { %v1267_v21 = vshll.u32 %v3626_v10, 30  ;;  %vm1135_vm1 = vcmp.lt.s32.totalorder %v1114_v42, 3  ;;  %v1141_v23 = vsel %vm1133_vm0, %v1120_v6, %v1123_v7  ;;  %v1307_v24 = vand.u32 2147483647, %v3575_v27 }
 0x347   : > { %v1143_v19 = vsel %vm1135_vm1, %v1126_v17, %v1142_v12  ;;  %v1334_v29 = vshrl.u32 %v3072_v57, %v3630_v15  ;;  %vm1421_vm2 = vcmp.gt.s32.totalorder %v1420_v16, 0  ;;  %v1149_v31 = vshll.u32 %v1109_v4, 8 }
 0x348   : > { %v3637_v25 = vsub.s32 %v1264_v59, %v1267_v21  ;;  %vm1134_vm3 = vcmp.lt.s32.totalorder %v1114_v42, 2  ;;  %v1138_v32 = vsel %vm1136_vm15, %v1126_v17, 2102212464  ;;  %v1145_v33 = vsel %vm1133_vm0, %v1123_v7, %v1126_v17 }
 0x349   : > { %v1147_v34 = vsel %vm1135_vm1, %v1129_v60, %v1146_v22  ;;  %v1333_v39 = vshll.u32 %v3071_v54, %v3620_v63  ;;  %v1117_v40 = vshrl.u32 %v3068_v41, %v1116_v30  ;;  %v1144_v45 = vsel %vm1134_vm3, %v1141_v23, %v1143_v19 }
 0x34a   : > { %v1270_v35 = vsub.s32 0, %v3637_v25  ;;  %v3649_v49 = vshrl.u32 %v1319_v37, 5  ;;  %v1337_v52 = vshrl.u32 %v3073_v61, %v3630_v15  ;;  %v3653_v53 = vsel %vm1421_vm2, %v1420_v16, 0 }
 0x34b   : > { %v1148_v55 = vsel %vm1134_vm3, %v1145_v33, %v1147_v34  ;;  %v1335_v59 = vor.u32 %v1334_v29, %v1333_v39  ;;  %v1137_v60 = vsel %vm1133_vm0, %v1117_v40, %v1120_v6  ;;  %v1139_v62 = vsel %vm1135_vm1, %v1123_v7, %v1138_v32 }
 0x34c   : > { %v2347_v56 = vmin.u32 %v1270_v35, %v3637_v25  ;;  %v3659_v0 = vmul.u32.u64.low %v1149_v31, %v1148_v55  ;;  %v3660_v30 = vmul.u32.u64.high %v1149_v31, %v1148_v55, %v3659_v0  ;;  %v1336_v2 = vshll.u32 %v3072_v57, %v3620_v63 }
 0x34d   : > { %v3662_v38 = vmul.u32.u64.low %v1149_v31, %v1144_v45  ;;  %v3663_v37 = vmul.u32.u64.high %v1149_v31, %v1144_v45, %v3662_v38  ;;  %v3669_v3 = vand.u32 31, %v3653_v53  ;;  %v1140_v4 = vsel %vm1134_vm3, %v1137_v60, %v1139_v62 }
 0x34e   : > { %v1272_v1 = vclz %v2347_v56  ;;  %v1314_v6 = vand.u32 8388607, %v1307_v24  ;;  %v1260_v7 = vadd.s32 %v3602_v28, %v3599_v26  ;;  %v1338_v9 = vor.u32 %v1337_v52, %v1336_v2 }
 0x34f   : > { %vm1342_vm6 = vcmp.lt.s32.totalorder %v3649_v49, 4  ;;  %vm1158_vm7 = vc.u32 %v3660_v30, %v3662_v38  ;;  %v1159_v16 = vadd.s32 1, %v3663_v37  ;;  %v1325_v42 = vshrl.u32 %v3069_v43, %v3630_v15 }
 0x350   : > { %v2348_v8 = vadd.s32 4294967294, %v1272_v1  ;;  %v1348_v12 = vsel %vm1342_vm6, %v1335_v59, 920167782  ;;  %v3685_v17 = vsub.s32 32, %v3669_v3  ;;  %v1156_v26 = vmul.u32 %v1149_v31, %v1140_v4 }
 0x351   : > { %v1324_v28 = vshll.u32 %v3068_v41, %v3620_v63  ;;  %v1160_v22 = vsel %vm1158_vm7, %v1159_v16, %v3663_v37  ;;  %v1327_v23 = vshll.u32 %v3069_v43, %v3620_v63  ;;  %v1328_v19 = vshrl.u32 %v3070_v48, %v3630_v15 }
 0x352   : > { %vm2349_vm8 = vcmp.lt.s32.totalorder %v2348_v8, 0  ;;  %v1352_v33 = vsel %vm1342_vm6, %v1338_v9, 1326507024  ;;  %v1161_v31 = vadd.s32 %v1160_v22, %v1156_v26  ;;  %v1330_v40 = vshll.u32 %v3070_v48, %v3620_v63 }
 0x353   : > { %v1275_v21 = vsel %vm2349_vm8, 0, %v2348_v8  ;;  %v1326_v35 = vor.u32 %v1325_v42, %v1324_v28  ;;  %v1329_v39 = vor.u32 %v1328_v19, %v1327_v23  ;;  %v1331_v45 = vshrl.u32 %v3071_v54, %v3630_v15 }
 0x354   : > { %v1276_v29 = vsub.s32 32, %v1275_v21  ;;  %v1280_v32 = vsub.s32 4294967266, %v1275_v21  ;;  %v1437_v56 = vshrl.u32 %v3072_v57, %v3685_v17  ;;  %v1162_v60 = vadd.s32 536870912, %v1161_v31 }
 0x355   : > { %v1277_v62 = vshll.u32 %v3637_v25, %v1275_v21  ;;  %v1315_v0 = vor.u32 8388608, %v1314_v6  ;;  %v1332_v37 = vor.u32 %v1331_v45, %v1330_v40  ;;  %vm1341_vm9 = vcmp.lt.s32.totalorder %v3649_v49, 3 }
 0x356   : > { %v1278_v52 = vshrl.u32 %v1260_v7, %v1276_v29  ;;  %v1281_v55 = vadd.s32 127, %v1280_v32  ;;  %v3708_v2 = vshrl.u32 %v1162_v60, 30  ;;  %vm1339_vm10 = vcmp.lt.s32.totalorder %v3649_v49, 1 }
 0x357   : > { %v3696_v34 = vpop.trf.xlu1  ;;  %v1353_v63 = vsel %vm1341_vm9, %v1335_v59, %v1352_v33  ;;  %vm1340_vm11 = vcmp.lt.s32.totalorder %v3649_v49, 2  ;;  %v1347_v25 = vsel %vm1339_vm10, %v1326_v35, %v1329_v39  ;;  %v1349_v6 = vsel %vm1341_vm9, %v1332_v37, %v1348_v12 }
 0x358   : > { %2476 = vmatprep.mubr.msk.f32.mxu1 %vm937_vm4, %v3696_v34  ;;  %v1282_v1 = vshll.u32 %v1281_v55, 23  ;;  %v1351_v7 = vsel %vm1339_vm10, %v1329_v39, %v1332_v37  ;;  %v1279_v8 = vor.u32 %v1278_v52, %v1277_v62  ;;  %v1164_v16 = vshll.u32 %v3708_v2, 30 }
 0x359   : > { %v1344_v59 = vsel %vm1342_vm6, %v1332_v37, 2102212464  ;;  %v3728_v42 = vshrl.u32 %v3653_v53, 5  ;;  %v1323_v26 = vshrl.u32 %v3068_v41, %v3630_v15  ;;  %v1354_v28 = vsel %vm1340_vm11, %v1351_v7, %v1353_v63 }
 0x35a   : > { %v1283_v9 = vor.u32 4788187, %v1282_v1  ;;  %v1355_v12 = vshll.u32 %v1315_v0, 8  ;;  %v1436_v22 = vshll.u32 %v3071_v54, %v3669_v3  ;;  %v3736_v23 = vsub.s32 %v1161_v31, %v1164_v16 }
 0x35b   : > { %v3710_v4 = vpop.trf.xlu1  ;;  %v1350_v19 = vsel %vm1340_vm11, %v1347_v25, %v1349_v6  ;;  %v1343_v53 = vsel %vm1339_vm10, %v1323_v26, %v1326_v35  ;;  %v1345_v15 = vsel %vm1341_vm9, %v1329_v39, %v1344_v59  ;;  %v1286_v40 = vcvt.s32.f32 %v1279_v8 }
 0x35c   : > { %2477 = vmatmul.mubr.msk.f32.vlgmr.msra.gmra.mrb[2].mxu1 %vm937_vm4, %v3710_v4  ;;  %v1284_v21 = vand.u32 2147483647, %v1283_v9  ;;  %v3746_v32 = vmul.u32.u64.low %v1355_v12, %v1354_v28  ;;  %v3747_v33 = vmul.u32.u64.high %v1355_v12, %v1354_v28, %v3746_v32  ;;  %v1438_v31 = vor.u32 %v1437_v56, %v1436_v22 }
 0x35d   : > { %v1440_v45 = vshrl.u32 %v3073_v61, %v3685_v17  ;;  %v1167_v52 = vsub.s32 0, %v3736_v23  ;;  %v3754_v55 = vmul.u32.u64.low %v1355_v12, %v1350_v19  ;;  %v3755_v60 = vmul.u32.u64.high %v1355_v12, %v1350_v19, %v3754_v55 }
 0x35e   : > { %v1410_v35 = vand.u32 2147483647, %v3584_v51  ;;  %v1287_v39 = vmul.f32 %v1286_v40, %v1284_v21  ;;  %v1439_v62 = vshll.u32 %v3072_v57, %v3669_v3  ;;  %v1346_v56 = vsel %vm1340_vm11, %v1343_v53, %v1345_v15 }
 0x35f   : > { %v3740_v29 = vpop.trf.xlu1  ;;  %v2343_v0 = vmin.u32 %v1167_v52, %v3736_v23  ;;  %vm1206_vm12 = vcmp.lt.s32.totalorder %v3566_v11, 0  ;;  %vm1445_vm13 = vcmp.lt.s32.totalorder %v3728_v42, 4  ;;  %vm1364_vm14 = vc.u32 %v3747_v33, %v3754_v55 }
 0x360   : > { %2479 = vmatprep.mubr.msk.f32.mxu1 %vm937_vm4, %v3740_v29  ;;  %v1441_v61 = vor.u32 %v1440_v45, %v1439_v62  ;;  %v1451_v1 = vsel %vm1445_vm13, %v1438_v31, 920167782  ;;  %v1362_v57 = vmul.u32 %v1355_v12, %v1346_v56  ;;  %v1365_v49 = vadd.s32 1, %v3755_v60 }
 0x361   : > { %v1169_v63 = vclz %v2343_v0  ;;  %v1417_v25 = vand.u32 8388607, %v1410_v35  ;;  %v1428_v6 = vshrl.u32 %v3069_v43, %v3685_v17  ;;  %v1288_v7 = vxor.u32 2147483648, %v1287_v39  ;;  %v1742_v0 = vld [vmem:[%s4064_s24] sm:$0xff] }
 0x362   : > { %v1427_v9 = vshll.u32 %v3068_v41, %v3669_v3  ;;  %v1431_v16 = vshrl.u32 %v3070_v48, %v3685_v17  ;;  %vm3785_vm15 = vcmp.le.f32.partialorder %v1204_v13, 0.7853982  ;;  %v1366_v26 = vsel %vm1364_vm14, %v1365_v49, %v3755_v60 }
 0x363   : > { %v3764_v37 = vpop.trf.xlu1  ;;  %v2344_v8 = vadd.s32 4294967294, %v1169_v63  ;;  %v1430_v28 = vshll.u32 %v3069_v43, %v3669_v3  ;;  %v1433_v12 = vshll.u32 %v3070_v48, %v3669_v3  ;;  %v1434_v21 = vshrl.u32 %v3071_v54, %v3685_v17 }
 0x364   : > { %2480 = vmatmul.mubr.msk.f32.gmra.mrb[4].mxu1 %vm937_vm4, %v3764_v37  ;;  %v1455_v22 = vsel %vm1445_vm13, %v1441_v61, 1326507024  ;;  %v1157_v13 = vadd.s32 %v3662_v38, %v3660_v30  ;;  %v1367_v19 = vadd.s32 %v1366_v26, %v1362_v57  ;;  %v1429_v15 = vor.u32 %v1428_v6, %v1427_v9 }
 0x365   : > { %vm2345_vm0 = vcmp.lt.s32.totalorder %v2344_v8, 0  ;;  %v1432_v32 = vor.u32 %v1431_v16, %v1430_v28  ;;  %v1435_v40 = vor.u32 %v1434_v21, %v1433_v12  ;;  %v1418_v60 = vor.u32 8388608, %v1417_v25 }
 0x366   : > { %v1172_v53 = vsel %vm2345_vm0, 0, %v2344_v8  ;;  %v1368_v52 = vadd.s32 536870912, %v1367_v19  ;;  %v1289_v48 = vsel %vm1206_vm12, %v1288_v7, %v1287_v39  ;;  %v1426_v54 = vshrl.u32 %v3068_v41, %v3685_v17  ;;  %v1743_v39 = vld [vmem:[%s4064_s24 + $0x8] sm:$0xff] }
 0x367   : > { %v1173_v45 = vsub.s32 32, %v1172_v53  ;;  %v1177_v43 = vsub.s32 4294967266, %v1172_v53  ;;  %vm1442_vm1 = vcmp.lt.s32.totalorder %v3728_v42, 1  ;;  %vm1444_vm2 = vcmp.lt.s32.totalorder %v3728_v42, 3 }
 0x368   : > { %v1174_v30 = vshll.u32 %v3736_v23, %v1172_v53  ;;  %v3807_v62 = vshrl.u32 %v1368_v52, 30  ;;  %v1450_v41 = vsel %vm1442_vm1, %v1429_v15, %v1432_v32  ;;  %v1452_v17 = vsel %vm1444_vm2, %v1435_v40, %v1451_v1 }
 0x369   : > { %v1175_v38 = vshrl.u32 %v1157_v13, %v1173_v45  ;;  %v1178_v3 = vadd.s32 127, %v1177_v43  ;;  %v1454_v23 = vsel %vm1442_vm1, %v1432_v32, %v1435_v40  ;;  %v1456_v56 = vsel %vm1444_vm2, %v1438_v31, %v1455_v22 }
 0x36a   : > { %v1370_v57 = vshll.u32 %v3807_v62, 30  ;;  %vm1443_vm3 = vcmp.lt.s32.totalorder %v3728_v42, 2  ;;  %v1447_v49 = vsel %vm1445_vm13, %v1435_v40, 2102212464  ;;  %v1458_v6 = vshll.u32 %v1418_v60, 8 }
 0x36b   : > { %v1176_v61 = vor.u32 %v1175_v38, %v1174_v30  ;;  %v1179_v63 = vshll.u32 %v1178_v3, 23  ;;  %v1457_v25 = vsel %vm1443_vm3, %v1454_v23, %v1456_v56  ;;  %v2566_v1 = vpack.c.bf16 %v1743_v39, %v1742_v0 }
 0x36c   : > { %v1292_v7 = vsel %vm3785_vm15, %v3566_v11, %v1289_v48  ;;  %v1371_v31 = vsub.s32 %v1367_v19, %v1370_v57  ;;  %v1453_v9 = vsel %vm1443_vm3, %v1450_v41, %v1452_v17  ;;  %v1446_v16 = vsel %vm1442_vm1, %v1426_v54, %v1429_v15 }
 0x36d   : > { %v1180_v8 = vor.u32 4788187, %v1179_v63  ;;  %v3836_v26 = vmul.u32.u64.low %v1458_v6, %v1457_v25  ;;  %v3837_v28 = vmul.u32.u64.high %v1458_v6, %v1457_v25, %v3836_v26  ;;  %2567 = vmatprep.subr.bf16.mxu1 %v2566_v1  ;;  %v1183_v21 = vcvt.s32.f32 %v1176_v61 }
 0x36e   : > { %v1373_v22 = vsub.s32 0, %v1371_v31  ;;  %v1448_v13 = vsel %vm1444_vm2, %v1432_v32, %v1447_v49  ;;  %2569 = vmatpush3.bf16.msra.mxu1 %v2566_v1  ;;  %2740 = vcosq.f32 %v1292_v7  ;;  %v1290_v40 = vsub.s32 4, %v3626_v10 }
 0x36f   : > { %v1181_v12 = vand.u32 2147483647, %v1180_v8  ;;  %v3841_v53 = vmul.u32.u64.low %v1458_v6, %v1453_v9  ;;  %v3842_v19 = vmul.u32.u64.high %v1458_v6, %v1453_v9, %v3841_v53  ;;  %2742 = vsinq.f32 %v1292_v7 }
 0x370   : > { %v2351_v45 = vmin.u32 %v1373_v22, %v1371_v31  ;;  %v1449_v43 = vsel %vm1443_vm3, %v1446_v16, %v1448_v13  ;;  %vm3852_vm7 = vcmp.le.f32.partialorder %v1101_v36, 0.7853982  ;;  %vm1103_vm8 = vcmp.lt.s32.totalorder %v3570_v18, 0 }
 0x371   : > { %v1184_v15 = vmul.f32 %v1183_v21, %v1181_v12  ;;  %vm1467_vm6 = vc.u32 %v3837_v28, %v3841_v53  ;;  %v1187_v48 = vsub.s32 4, %v3708_v2  ;;  %v1468_v54 = vadd.s32 1, %v3842_v19 }
 0x372   : > { %v1375_v60 = vclz %v2351_v45  ;;  %v1291_v42 = vsel %vm1206_vm12, %v1290_v40, %v3626_v10  ;;  %v1465_v3 = vmul.u32 %v1458_v6, %v1449_v43  ;;  %v1363_v10 = vadd.s32 %v3754_v55, %v3747_v33 }
 0x373   : > { %v1185_v52 = vxor.u32 2147483648, %v1184_v15  ;;  %v1469_v0 = vsel %vm1467_vm6, %v1468_v54, %v3842_v19  ;;  %v1188_v41 = vsel %vm1103_vm8, %v1187_v48, %v3708_v2  ;;  %v1293_v17 = vsel %vm3785_vm15, 0, %v1291_v42 }
 0x374   : > { %v2352_v38 = vadd.s32 4294967294, %v1375_v60  ;;  %v1470_v39 = vadd.s32 %v1469_v0, %v1465_v3  ;;  %v1190_v2 = vsel %vm3852_vm7, 0, %v1188_v41  ;;  %v1297_v8 = vand.u32 3, %v1293_v17 }
 0x375   : > { %v1186_v30 = vsel %vm1103_vm8, %v1185_v52, %v1184_v15  ;;  %v1194_v55 = vand.u32 3, %v1190_v2  ;;  %vm1296_vm12 = vweird.f32 %v3566_v11  ;;  %vm1193_vm1 = vweird.f32 %v3570_v18 }
 0x376   : > { %v1189_v36 = vsel %vm3852_vm7, %v3570_v18, %v1186_v30  ;;  %vm2353_vm9 = vcmp.lt.s32.totalorder %v2352_v38, 0  ;;  %v1471_v63 = vadd.s32 536870912, %v1470_v39  ;;  %vm1299_vm10 = vcmp.eq.s32.totalorder %v1297_v8, 0 }
 0x377   : > { %2744 = vcosq.f32 %v1189_v36  ;;  %v1378_v23 = vsel %vm2353_vm9, 0, %v2352_v38  ;;  %vm1302_vm11 = vcmp.eq.s32.totalorder %v1297_v8, 2  ;;  %vm1199_vm13 = vcmp.eq.s32.totalorder %v1194_v55, 2 }
 0x378   : > { %2746 = vsinq.f32 %v1189_v36  ;;  %v1379_v56 = vsub.s32 32, %v1378_v23  ;;  %v1383_v61 = vsub.s32 4294967266, %v1378_v23  ;;  %v2741_v57 = vpop.eup %2740  ;;  %v1380_v25 = vshll.u32 %v1371_v31, %v1378_v23 }
 0x379   : > { %v2743_v49 = vpop.eup %2742  ;;  %v3871_v7 = vshrl.u32 %v1471_v63, 30  ;;  %v1303_v33 = vxor.u32 2147483648, %v2741_v57  ;;  %vm1195_vm14 = vcmp.lt.s32.totalorder %v1194_v55, 2  ;;  %vm1196_vm15 = vcmp.eq.s32.totalorder %v1194_v55, 0 }
 0x37a   : > { %v1381_v6 = vshrl.u32 %v1363_v10, %v1379_v56  ;;  %v1384_v1 = vadd.s32 127, %v1383_v61  ;;  %v1300_v26 = vxor.u32 2147483648, %v2743_v49  ;;  %vm1298_vm0 = vcmp.lt.s32.totalorder %v1297_v8, 2 }
 0x37b   : > { %v1473_v16 = vshll.u32 %v3871_v7, 30  ;;  %v1304_v43 = vsel %vm1302_vm11, %v1303_v33, %v2743_v49  ;;  %vm3880_vm2 = vcmp.le.f32.partialorder %v1307_v24, 0.7853982  ;;  %vm1309_vm3 = vcmp.lt.s32.totalorder %v3575_v27, 0 }
 0x37c   : > { %v1382_v59 = vor.u32 %v1381_v6, %v1380_v25  ;;  %v1385_v9 = vshll.u32 %v1384_v1, 23  ;;  %v1301_v45 = vsel %vm1299_vm10, %v2741_v57, %v1300_v26  ;;  %v1393_v41 = vsub.s32 4, %v3807_v62 }
 0x37d   : > { %v1474_v21 = vsub.s32 %v1470_v39, %v1473_v16  ;;  %v1305_v42 = vsel %vm1298_vm0, %v1301_v45, %v1304_v43  ;;  %v1466_v56 = vadd.s32 %v3841_v53, %v3837_v28  ;;  %vm1399_vm10 = vweird.f32 %v3575_v27 }
 0x37e   : > { %v1386_v12 = vor.u32 4788187, %v1385_v9  ;;  %v1389_v13 = vcvt.s32.f32 %v1382_v59  ;;  %v1306_v23 = vsel %vm1296_vm12, nan, %v1305_v42  ;;  %v1394_v10 = vsel %vm1309_vm3, %v1393_v41, %v3807_v62  ;;  %v1745_v42 = vld [vmem:[%s4064_s24 + $0x18] sm:$0xff] }
 0x37f   : > { %v1476_v19 = vsub.s32 0, %v1474_v21  ;;  %v1396_v25 = vsel %vm3880_vm2, 0, %v1394_v10  ;;  %vm1412_vm11 = vcmp.lt.s32.totalorder %v3584_v51, 0  ;;  %vm1411_vm12 = vcmp.le.f32.partialorder %v1410_v35, 0.7853982 }
 0x380   : > { %v1387_v31 = vand.u32 2147483647, %v1386_v12  ;;  %v1400_v2 = vand.u32 3, %v1396_v25  ;;  %vm1502_vm0 = vweird.f32 %v3584_v51 }
 0x381   : > { %v2745_v22 = vpop.eup %2744  ;;  %v2355_v32 = vmin.u32 %v1476_v19, %v1474_v21 }
 0x382   : > { %v2747_v40 = vpop.eup %2746  ;;  %v1200_v15 = vxor.u32 2147483648, %v2745_v22  ;;  %v1390_v60 = vmul.f32 %v1389_v13, %v1387_v31  ;;  %vm1405_vm7 = vcmp.eq.s32.totalorder %v1400_v2, 2  ;;  %vm1402_vm8 = vcmp.eq.s32.totalorder %v1400_v2, 0 }
 0x383   : > { %v1197_v52 = vxor.u32 2147483648, %v2747_v40  ;;  %v1478_v38 = vclz %v2355_v32  ;;  %vm1401_vm9 = vcmp.lt.s32.totalorder %v1400_v2, 2  ;;  %v1496_v13 = vsub.s32 4, %v3871_v7 }
 0x384   : > { %v1201_v48 = vsel %vm1199_vm13, %v1200_v15, %v2747_v40  ;;  %v1391_v30 = vxor.u32 2147483648, %v1390_v60 }
 0x385   : > { %v1198_v54 = vsel %vm1196_vm15, %v2745_v22, %v1197_v52  ;;  %v2356_v17 = vadd.s32 4294967294, %v1478_v38  ;;  %v1497_v40 = vsel %vm1412_vm11, %v1496_v13, %v3871_v7  ;;  %v1744_v7 = vld [vmem:[%s4064_s24 + $0x10] sm:$0xff] }
 0x386   : > { %v1202_v3 = vsel %vm1195_vm14, %v1198_v54, %v1201_v48  ;;  %v1392_v39 = vsel %vm1309_vm3, %v1391_v30, %v1390_v60  ;;  %v1499_v15 = vsel %vm1411_vm12, 0, %v1497_v40  ;;  %v2570_v30 = vpack.c.bf16 %v1745_v42, %v1744_v7 }
 0x387   : > { %v1203_v0 = vsel %vm1193_vm1, nan, %v1202_v3  ;;  %v1395_v18 = vsel %vm3880_vm2, %v3575_v27, %v1392_v39  ;;  %vm2357_vm6 = vcmp.lt.s32.totalorder %v2356_v17, 0  ;;  %v1503_v27 = vand.u32 3, %v1499_v15 }
 0x388   : > { %2494 = vmatprep.mubr.msk.f32.mxu0 %vm937_vm4, %v1203_v0  ;;  %2748 = vcosq.f32 %v1395_v18  ;;  %v1481_v24 = vsel %vm2357_vm6, 0, %v2356_v17  ;;  %2571 = vmatprep.subr.bf16.mxu1 %v2570_v30  ;;  %vm1746_vm1 = vcmask 261120  }
 0x389   : > { %2495 = vmatmul.mubr.msk.f32.vlgmr.msra.gmra.mrb[6].mxu0 %vm937_vm4, %v1306_v23  ;;  %2750 = vsinq.f32 %v1395_v18  ;;  %v1482_v61 = vsub.s32 32, %v1481_v24  ;;  %v1486_v63 = vsub.s32 4294967266, %v1481_v24  ;;  %v1483_v57 = vshll.u32 %v1474_v21, %v1481_v24  ;;  %2573 = vmatpush3.bf16.msra.mxu1 %v2570_v30 }
 0x38a   : > { %vm1508_vm13 = vcmp.eq.s32.totalorder %v1503_v27, 2  ;;  %vm1505_vm14 = vcmp.eq.s32.totalorder %v1503_v27, 0  ;;  %vm1504_vm15 = vcmp.lt.s32.totalorder %v1503_v27, 2  ;;  %2574 = vmatprep.subr.bf16.mxu1 %v3065_v20 }
 0x38b   : > { %v1484_v11 = vshrl.u32 %v1466_v56, %v1482_v61  ;;  %v1487_v49 = vadd.s32 127, %v1486_v63 }
 0x38d   : > { %v1485_v6 = vor.u32 %v1484_v11, %v1483_v57  ;;  %v1488_v1 = vshll.u32 %v1487_v49, 23 }
 0x38f   : > { %v1489_v8 = vor.u32 4788187, %v1488_v1  ;;  %v1492_v16 = vcvt.s32.f32 %v1485_v6 }
 0x391   : > { %v1490_v9 = vand.u32 2147483647, %v1489_v8 }
 0x392   : > { %v2749_v59 = vpop.eup %2748 }
 0x393   : > { %v2751_v26 = vpop.eup %2750  ;;  %v1406_v62 = vxor.u32 2147483648, %v2749_v59  ;;  %v1493_v28 = vmul.f32 %v1492_v16, %v1490_v9 }
 0x394   : > { %v1403_v33 = vxor.u32 2147483648, %v2751_v26 }
 0x395   : > { %v1407_v53 = vsel %vm1405_vm7, %v1406_v62, %v2751_v26  ;;  %v1494_v12 = vxor.u32 2147483648, %v1493_v28 }
 0x396   : > { %v1404_v55 = vsel %vm1402_vm8, %v2749_v59, %v1403_v33 }
 0x397   : > { %v1408_v21 = vsel %vm1401_vm9, %v1404_v55, %v1407_v53  ;;  %v1495_v31 = vsel %vm1412_vm11, %v1494_v12, %v1493_v28 }
 0x398   : > { %v1409_v22 = vsel %vm1399_vm10, nan, %v1408_v21  ;;  %v1498_v19 = vsel %vm1411_vm12, %v3584_v51, %v1495_v31 }
 0x399   : > { %2497 = vmatprep.mubr.msk.f32.mxu0 %vm937_vm4, %v1409_v22  ;;  %2752 = vcosq.f32 %v1498_v19 }
 0x39a   : > { %2754 = vsinq.f32 %v1498_v19 }
 0x3a3   : > { %v2753_v45 = vpop.eup %2752 }
 0x3a4   : > { %v2755_v43 = vpop.eup %2754  ;;  %v1509_v52 = vxor.u32 2147483648, %v2753_v45 }
 0x3a5   : > { %v1506_v60 = vxor.u32 2147483648, %v2755_v43 }
 0x3a6   : > { %v1510_v35 = vsel %vm1508_vm13, %v1509_v52, %v2755_v43 }
 0x3a7   : > { %v1507_v32 = vsel %vm1505_vm14, %v2753_v45, %v1506_v60 }
 0x3a8   : > { %v1511_v48 = vsel %vm1504_vm15, %v1507_v32, %v1510_v35 }
 0x3a9   : > { %v1512_v54 = vsel %vm1502_vm0, nan, %v1511_v48 }
 0x3aa   : > { %2498 = vmatmul.mubr.msk.f32.gmra.mrb[8].mxu0 %vm937_vm4, %v1512_v54 }
 0x3ab   : > { %2541 = vmatprep.mubr.msk.f32.mxu0 %vm3067_vm5, %v3063_v14 }
 0x42f   : > { %v2478_v51 = vpop.f32.mrb[2].mxu1 }
 0x430   : > { %v1016_v38 = vpop.f32.mrb[3].mxu1 }
 0x437   : > { %v2481_v3 = vpop.f32.mrb[4].mxu1 }
 0x438   : > { %v1026_v36 = vpop.f32.mrb[5].mxu1 }
 0x45c   : > { %v2496_v0 = vpop.f32.mrb[6].mxu0 }
 0x45d   : > { %v1715_v39 = vadd.f32 %v2496_v0, %v3522_v44  ;;  %1724 = vrot.lane.b32.xlu0 %v2496_v0, %s3074_s17  ;;  %v1695_v41 = vpop.f32.mrb[7].mxu0 }
 0x45e   : > { %v1714_v17 = vadd.f32 %v1695_v41, %v3525_v46 }
 0x45f   : > { %v1739_v23 = vmul.f32 %v2478_v51, %v1715_v39 }
 0x460   : > { %v1738_v18 = vmul.f32 %v1714_v17, %v1016_v38 }
 0x461   : > { %1722 = vrot.lane.b32.xlu0 %v1695_v41, %s3074_s17 }
 0x462   : > { %2508 = vmatprep.mubr.msk.f32.mxu1 %vm1746_vm1, %v1738_v18 }
 0x463   : > { %2509 = vmatmul.mubr.msk.f32.vlgmr.msra.gmra.mrb[6].mxu1 %vm1746_vm1, %v1739_v23 }
 0x47d   : > { %v2499_v24 = vpop.f32.mrb[8].mxu0 }
 0x47e   : > { %v1717_v10 = vadd.f32 %v2499_v24, %v3527_v47  ;;  %v1705_v56 = vpop.f32.mrb[9].mxu0  ;;  %1728 = vrot.lane.b32.xlu0 %v2499_v24, %s3074_s17 }
 0x47f   : > { %v1716_v61 = vadd.f32 %v1705_v56, %v3530_v50  ;;  %1726 = vrot.lane.b32.xlu1 %v1705_v56, %s3074_s17 }
 0x480   : > { %v1741_v63 = vmul.f32 %v2481_v3, %v1717_v10 }
 0x481   : > { %v1740_v57 = vmul.f32 %v1716_v61, %v1026_v36 }
 0x483   : > { %2511 = vmatprep.mubr.msk.f32.mxu1 %vm1746_vm1, %v1740_v57 }
 0x484   : > { %2512 = vmatmul.mubr.msk.f32.gmra.mrb[8].mxu1 %vm1746_vm1, %v1741_v63 }
 0x485   : > { %2522 = vmatprep.mubr.msk.f32.mxu1 %vm3067_vm5, %v3063_v14 }
 0x4cf   : > { %v1725_v56 = vpop.permute.xlu0 %1724 }
 0x4d3   : > { %v1723_v61 = vpop.permute.xlu0 %1722 }
 0x4f0   : > { %v1729_v63 = vpop.permute.xlu0 %1728 }
 0x536   : > { %v2510_v11 = vpop.f32.mrb[6].mxu1 }
 0x537   : > { %v1845_v49 = vmul.f32 0.25, %v2510_v11  ;;  %v1825_v25 = vpop.f32.mrb[7].mxu1  ;;  %v1735_v11 = vadd.f32 %v3522_v44, %v1725_v56 }
 0x538   : > { %v1844_v6 = vmul.f32 0.25, %v1825_v25 }
 0x539   : > { %v1849_v1 = vsel %vm1746_vm1, %v1845_v49, -inf }
 0x53a   : > { %v1848_v2 = vsel %vm1746_vm1, %v1844_v6, -inf }
 0x53b   : > { %v1852_v8 = vmax.f32 %v1848_v2, %v1849_v1 }
 0x557   : > { %v2513_v59 = vpop.f32.mrb[8].mxu1 }
 0x558   : > { %v1847_v9 = vmul.f32 0.25, %v2513_v59  ;;  %v1835_v16 = vpop.f32.mrb[9].mxu1 }
 0x559   : > { %v1846_v26 = vmul.f32 0.25, %v1835_v16 }
 0x55a   : > { %v1851_v62 = vsel %vm1746_vm1, %v1847_v9, -inf }
 0x55b   : > { %v1850_v33 = vsel %vm1746_vm1, %v1846_v26, -inf }
 0x55c   : > { %v1853_v28 = vmax.f32 %v1850_v33, %v1851_v62 }
 0x55e   : > { %v1854_v53 = vmax.f32 %v1852_v8, %v1853_v28  ;;  %v1727_v8 = vpop.permute.xlu1 %1726 }
 0x55f   : > { %v1736_v16 = vadd.f32 %v1727_v8, %v3530_v50 }
 0x560   : > { %v1855_v14 = vrot.slane %v1854_v53, 4 }
 0x562   : > { %v1856_v55 = vmax.f32 %v1854_v53, %v1855_v14 }
 0x564   : > { %v1857_v12 = vrot.slane %v1856_v55, 2 }
 0x566   : > { %v1858_v21 = vmax.f32 %v1856_v55, %v1857_v12 }
 0x568   : > { %v1859_v22 = vrot.slane %v1858_v21, 1 }
 0x56a   : > { %v1860_v31 = vmax.f32 %v1858_v21, %v1859_v22 }
 0x56c   : > { %v1861_v13 = vsub.f32 %v1844_v6, %v1860_v31  ;;  %v1862_v19 = vsub.f32 %v1845_v49, %v1860_v31  ;;  %v1863_v40 = vsub.f32 %v1846_v26, %v1860_v31  ;;  %v1864_v15 = vsub.f32 %v1847_v9, %v1860_v31 }
 0x56d   : > { %v1734_v49 = vadd.f32 %v1723_v61, %v3525_v46  ;;  %v1737_v9 = vadd.f32 %v3527_v47, %v1729_v63 }
 0x56e   : > { %v1865_v27 = vmul.f32 1.442695, %v1861_v13  ;;  %v1867_v45 = vmul.f32 1.442695, %v1862_v19  ;;  %v1869_v43 = vmul.f32 1.442695, %v1863_v40 }
 0x56f   : > { %v1871_v52 = vmul.f32 1.442695, %v1864_v15 }
 0x570   : > { %2756 = vpow2.f32 %v1865_v27 }
 0x571   : > { %2758 = vpow2.f32 %v1867_v45 }
 0x572   : > { %2760 = vpow2.f32 %v1869_v43 }
 0x573   : > { %2762 = vpow2.f32 %v1871_v52 }
 0x57a   : > { %v2757_v60 = vpop.eup %2756 }
 0x57b   : > { %v2759_v35 = vpop.eup %2758 }
 0x57c   : > { %v2761_v32 = vpop.eup %2760  ;;  %v2575_v48 = vpack.c.bf16 %v2759_v35, %v2757_v60 }
 0x57d   : > { %v2763_v54 = vpop.eup %2762 }
 0x57e   : > { %2576 = vmatpush3.bf16.msra.mxu1 %v2575_v48  ;;  %v2578_v7 = vpack.c.bf16 %v2763_v54, %v2761_v32 }
 0x57f   : > { %2577 = vmatprep.subr.bf16.mxu1 %v3065_v20 }
 0x582   : > { %2579 = vmatpush3.bf16.msra.mxu1 %v2578_v7 }
 0x585   : > { %2523 = vmatmul.mubr.msk.f32.vlgmr.msra.gmra.mrb[10].mxu1 %vm1746_vm1, %v3539_v58 }
 0x586   : > { %2527 = vmatprep.mubr.msk.f32.mxu1 %vm937_vm4, %v3696_v34 }
 0x658   : > { %v1942_v42 = vpop.f32.mrb[10].mxu1 }
 0x659   : > { %v2524_v30 = vpop.f32.mrb[11].mxu1  ;;  %2525 = vmatprep.subr.mxu1 %v1942_v42 }
 0x65a   : > { %2526 = vmatpush3.msra.mxu1 %v1942_v42 }
 0x65b   : > { %2528 = vmatmul.mubr.msk.f32.vlgmr.msra.gmra.mrb[12].mxu1 %vm937_vm4, %v3710_v4 }
 0x65c   : > { %2530 = vmatprep.mubr.msk.f32.mxu1 %vm937_vm4, %v3740_v29 }
 0x65f   : > { %2531 = vmatmul.mubr.msk.f32.gmra.mrb[14].mxu1 %vm937_vm4, %v3764_v37 }
 0x72e   : > { %v2529_v51 = vpop.f32.mrb[12].mxu1 }
 0x72f   : > { %2764 = vrcp.f32 %v2529_v51  ;;  %v2012_v38 = vpop.f32.mrb[13].mxu1  ;;  %vm2032_vm5 = vcmp.gt.f32.partialorder %v2529_v51, 0.0 }
 0x730   : > { %2766 = vrcp.f32 %v2012_v38  ;;  %vm2031_vm2 = vcmp.gt.f32.partialorder %v2012_v38, 0.0 }
 0x732   : > { %v2532_v3 = vpop.f32.mrb[14].mxu1 }
 0x733   : > { %v2022_v36 = vpop.f32.mrb[15].mxu1  ;;  %vm2034_vm3 = vcmp.gt.f32.partialorder %v2532_v3, 0.0 }
 0x734   : > { %2768 = vrcp.f32 %v2022_v36  ;;  %vm2033_vm4 = vcmp.gt.f32.partialorder %v2022_v36, 0.0 }
 0x735   : > { %2770 = vrcp.f32 %v2532_v3 }
 0x739   : > { %v2765_v34 = vpop.eup %2764 }
 0x73a   : > { %v2767_v0 = vpop.eup %2766  ;;  %v2038_v39 = vmul.f32 %v2765_v34, %v2759_v35 }
 0x73b   : > { %v2036_v4 = vmul.f32 %v2767_v0, %v2757_v60 }
 0x73c   : > { %v2044_v41 = vsel %vm2032_vm5, %v2038_v39, 0.0 }
 0x73d   : > { %2053 = vrot.lane.b32.xlu0 %v2044_v41, %s3074_s17  ;;  %v2043_v37 = vsel %vm2031_vm2, %v2036_v4, 0.0 }
 0x73e   : > { %v2769_v29 = vpop.eup %2768 }
 0x73f   : > { %v2040_v17 = vmul.f32 %v2769_v29, %v2761_v32  ;;  %v2771_v23 = vpop.eup %2770 }
 0x740   : > { %v2042_v24 = vmul.f32 %v2771_v23, %v2763_v54 }
 0x741   : > { %2051 = vrot.lane.b32.xlu0 %v2043_v37, %s3074_s17  ;;  %v2045_v18 = vsel %vm2033_vm4, %v2040_v17, 0.0 }
 0x742   : > { %v2046_v10 = vsel %vm2034_vm3, %v2042_v24, 0.0 }
 0x745   : > { %2055 = vrot.lane.b32.xlu0 %v2045_v18, %s3074_s17 }
 0x749   : > { %2057 = vrot.lane.b32.xlu0 %v2046_v10, %s3074_s17  ;;  %s3076_s17 = smov [#allocation14]  }
 0x7af   : > { %v2054_v57 = vpop.permute.xlu0 %2053 }
 0x7b0   : > { %v2064_v6 = vmul.f32 %v2054_v57, %v1735_v11 }
 0x7b3   : > { %v2052_v25 = vpop.permute.xlu0 %2051 }
 0x7b4   : > { %v2063_v1 = vmul.f32 %v2052_v25, %v1734_v49 }
 0x7b6   : > { %v2729_v2 = vpack.i.bf16 %v2064_v6, %v2063_v1 }
 0x7b7   : > { %v2056_v59 = vpop.permute.xlu0 %2055 }
 0x7b8   : > { %2730 = vrot.lane.b32.xlu0 %v2729_v2, %s3075_s21  ;;  %v2065_v62 = vmul.f32 %v2056_v59, %v1736_v16 }
 0x7bb   : > { %v2058_v26 = vpop.permute.xlu0 %2057 }
 0x7bc   : > { %v2066_v33 = vmul.f32 %v2058_v26, %v1737_v9 }
 0x7be   : > { %v2734_v28 = vpack.i.bf16 %v2066_v33, %v2065_v62 }
 0x7c0   : > { %2735 = vrot.lane.b32.xlu0 %v2734_v28, %s3075_s21 }
 0x7c4   : > { %2084 = vrot.lane.b32.xlu0 %v3562_v5, %s3075_s21  ;;  %s2974_s21 = sshll.u32 %s3076_s17, 4  ;;  %s2975_s21 = int_to_ptr.vmem [resolvable:$false] %s2974_s21 }
 0x7c5   : > { %s2976_s14 = scalar_lea.vmem %s2975_s21, 256  ;;  %p2977_p2 = scmp.lt.s32.totalorder %s3965_s7, %s2975_s21 }
 0x7c6   : > { %p2978_p3 = scmp.lt.s32.totalorder %s2976_s14, %s2970_s13 }
 0x7c8   : > { %p2979_p8 = por %p2978_p3, %p2977_p2 }
 0x7ca   : > { %p2980_p5 = pnand %p2979_p8, %p2973_p0 }
 0x82a   : > { %v2731_v44 = vpop.permute.xlu0 %2730 }
 0x82b   : > { %v2733_v46 = vunpack.i.h.bf16 %v2731_v44  ;;  %v2732_v53 = vunpack.i.l.bf16 %v2731_v44 }
 0x82d   : > { %v2581_v14 = vpack.c.bf16 %v2733_v46, %v2732_v53 }
 0x82f   : > { %2582 = vmatpush3.bf16.msra.mxu0 %v2581_v14 }
 0x830   : > { %2583 = vmatprep.subr.bf16.mxu0 %v3065_v20 }
 0x832   : > { %v2736_v55 = vpop.permute.xlu0 %2735 }
 0x833   : > { %v2738_v47 = vunpack.i.h.bf16 %v2736_v55  ;;  %v2737_v50 = vunpack.i.l.bf16 %v2736_v55 }
 0x835   : > { %v2584_v12 = vpack.c.bf16 %v2738_v47, %v2737_v50 }
 0x836   : > { %v2085_v5 = vpop.permute.xlu0 %2084 }
 0x837   : > { %2585 = vmatpush3.bf16.msra.mxu0 %v2584_v12 }
 0x83a   : > { %2542 = vmatmul.mubr.msk.f32.vlgmr.msra.gmra.mrb[10].mxu0 %vm1746_vm1, %v3539_v58 }
 0x90d   : > { %v2153_v21 = vpop.f32.mrb[10].mxu0 }
 0x90e   : > { %v2154_v22 = vadd.f32 %v2153_v21, %v2085_v5  ;;  %v2543_v31 = vpop.f32.mrb[11].mxu0 }
 0x910   : > { %2157 = vst.msk [vmem:[%s561_s6] sm:$0xff] %vm1746_vm1, %v2154_v22 }
 0x911   : > { %2983 = shalt.err (!%p2980_p5)
}
 0x912   : > { %s2984_s0 = scalar_lea.hbm %s3963_s27, 128  ;;  %s2988_s18 = scalar_lea.hbm %s4069_s25, 256 }
 0x913   : > { %p2985_p10 = scmp.ne.s32.totalorder %s3963_s27, %s2984_s0  ;;  %p2989_p7 = scmp.lt.u32.totalorder %s3963_s27, %s4069_s25 }
 0x914   : > { %p2990_p9 = scmp.lt.u32.totalorder %s2988_s18, %s2984_s0  ;;  %p2992_p6 = scmp.lt.u32.totalorder %s2984_s0, %s3963_s27 }
 0x915   : > { %p2986_p11 = pnand %p2985_p10, %p4071_p1 }
 0x916   : > { %p2991_p4 = por %p2990_p9, %p2989_p7 }
 0x917   : > { %p2987_p12 = pneg %p2986_p11 }
 0x918   : > { %p2993_p13 = por %p2992_p6, %p2991_p4 }
 0x91a   : > { %p2994_p0 = pnand %p2993_p13, %p2987_p12 }
 0x91c   : > { %2997 = shalt.err (!%p2994_p0)
}
 0x91d   : > { %2632 = dma.vmem_to_hbm [thread:$0]  (%p4071_p1), %s3965_s7, 128, %s3963_s27, %s2159_s19  }
 0x91e PF: > { %s2184_s13 = sand.u32 1, %s3040_s29   ;;  %p4072_p2 = scmp.ne.s32.totalorder %s4048_s22, 0 }
 0x91f   : > { %p4073_p3 = scmp.ge.s32.totalorder %s3052_s16, 2  ;;  %s2185_s14 = scalar_lea.sflag [#allocation4], %s2184_s13 }
 0x921   : > { %p2658_p8 = pnand %p4073_p3, %p4072_p2 }
 0x923   : > { %3035 = dma.done.wait (!%p2658_p8), %s2185_s14, 128  }
 0x924   : > { %3037 = vsyncadd (!%p2658_p8), %s2185_s14, 4294967168  ;;  %p30_p5 = scmp.ge.s32.totalorder %s3347_s23, 4   ;;  %s4074_s29 = smov %s3044_s30 }
 0x925   : > { %s4075_s30 = smov %s3048_s15  ;;  %s4076_s15 = smov %s3358_s28 }
 0x926   : > { %s4077_s16 = smov %s3347_s23  ;;  %32 = sbr.rel (!%p30_p5) target bundleno = 16 (0x10), region = 146 }
 0x92d   :  { %2190 = vsyncpa [#allocation3], 1 }
 0x92e   :  { %2192 = vsyncpa [#allocation3 + $0x1], 1 }
 0x92f   :  { %2193 = vsyncpa [#allocation6], 1 }
 0x930   :  { %2195 = vsyncpa [#allocation6 + $0x1], 1 }
 0x931   :  { %2196 = vsyncpa [#allocation9], 1 }
 0x932   :  { %2197 = vsyncpa [#allocation12], 1 }
 0x933   :  { %2198 = vsyncpa [#allocation4], 1 }
 0x934   :  { %2200 = vsyncpa [#allocation4 + $0x1], 1 }

</bundles_post_ra>
